<compile_context>
chip_gen: v6e
topology: v6e:2x2x1
jax: 0.10.0
libtpu: 0.0.40
codegen_flags: <defaults>
</compile_context>

<pallas_src>
import math

import jax
import jax.numpy as jnp
from jax.experimental import pallas as pl
from jax.experimental.pallas import tpu as pltpu


def _equivariant_tile_kernel(x_ref, w0_ref, rb_ref, cb_ref, y_ref):
    """One (tm, tn) tile: Y = X @ W0 + row_bias[:, None, :] + col_bias[None, :, :]."""
    tm, tn, din = x_ref.shape
    dout = y_ref.shape[-1]

    # Feed the MXU the native-dtype tile (no f32 copy); accumulate in f32.
    x2d = x_ref[...].reshape(tm * tn, din)
    acc = jnp.dot(x2d, w0_ref[...], preferred_element_type=jnp.float32)
    acc = acc.reshape(tm, tn, dout)

    # Fused adds of the precomputed pooled equivariant terms; single store.
    acc = acc + rb_ref[...][:, None, :] + cb_ref[...][None, :, :]
    y_ref[...] = acc.astype(y_ref.dtype)


def _pick_block(n, target):
    """Largest divisor of n that is <= target and a multiple of 8 (else n)."""
    if n <= target:
        return n
    for b in range(min(target, n), 0, -1):
        if n % b == 0 and b % 8 == 0:
            return b
    return n


def sparse_matrix_equivariant_block(x, weights, *, block_m=64, block_n=128):
    """x: (N1, N2, Din); weights: (4, Din, Dout)  ->  Y: (N1, N2, Dout)."""
    n1, n2, din = x.shape
    n_params, din_w, dout = weights.shape
    assert n_params == 4 and din_w == din

    # ---- pooled ops 1-3: negligible FLOPs, precomputed outside the kernel ----
    # Fold the 'mean' pool divisors into the weights (pool_op='mean').
    w0 = weights[0].astype(x.dtype)                        # MXU-native dtype
    w1 = weights[1].astype(jnp.float32) / jnp.float32(n2)
    w2 = weights[2].astype(jnp.float32) / jnp.float32(n1)
    w3 = weights[3].astype(jnp.float32) / jnp.float32(n1 * n2)

    xf = x.astype(jnp.float32)
    pool_cols = xf.sum(axis=1)                             # (N1, Din)  sum_b'
    pool_rows = xf.sum(axis=0)                             # (N2, Din)  sum_a'
    pool_all = pool_cols.sum(axis=0, keepdims=True)        # (1,  Din)

    row_bias = pool_cols @ w1 + pool_all @ w3              # (N1, Dout), op-3 folded in
    col_bias = pool_rows @ w2                              # (N2, Dout)

    # ---- tiled, double-buffered main kernel (op 0 + fused bias adds) --------
    tm = _pick_block(n1, block_m)
    tn = _pick_block(n2, block_n)
    grid = (n1 // tm, n2 // tn)

    return pl.pallas_call(
        _equivariant_tile_kernel,
        out_shape=jax.ShapeDtypeStruct((n1, n2, dout), x.dtype),
        grid=grid,
        in_specs=[
            pl.BlockSpec((tm, tn, din), lambda i, j: (i, j, 0)),   # X tile
            pl.BlockSpec((din, dout), lambda i, j: (0, 0)),        # W0 (VMEM-resident)
            pl.BlockSpec((tm, dout), lambda i, j: (i, 0)),         # row_bias tile
            pl.BlockSpec((tn, dout), lambda i, j: (j, 0)),         # col_bias tile
        ],
        out_specs=pl.BlockSpec((tm, tn, dout), lambda i, j: (i, j, 0)),
        compiler_params=pltpu.CompilerParams(
            dimension_semantics=("parallel", "parallel"),
        ),
    )(x, w0, row_bias, col_bias)


def _reference(x, w):
    """Pure-JAX reference of the same 4-op equivariant block (mean pooling)."""
    x = x.astype(jnp.float32)
    t0 = jnp.einsum("abi,io->abo", x, w[0])
    t1 = jnp.einsum("ai,io->ao", x.mean(axis=1), w[1])[:, None, :]
    t2 = jnp.einsum("bi,io->bo", x.mean(axis=0), w[2])[None, :, :]
    t3 = (x.mean(axis=(0, 1)) @ w[3])[None, None, :]
    return t0 + t1 + t2 + t3


if __name__ == "__main__":
    # Small shapes consistent with the module: entity_A has 32 instances,
    # entity_B has 128, in_dim=64, out_dim=128 (lane-dense output).
    N1, N2, DIN, DOUT = 32, 128, 64, 128

    key = jax.random.PRNGKey(0)
    kx, kw = jax.random.split(key)

    x = jax.random.normal(kx, (N1, N2, DIN), dtype=jnp.float32)

    # Deterministic parameter init matching nn.Parameter(...).uniform_(-stdv, stdv).
    stdv = 1.0 / math.sqrt(DIN)
    weights = jax.random.uniform(
        kw, (4, DIN, DOUT), minval=-stdv, maxval=stdv, dtype=jnp.float32
    )

    # Small explicit tiles so the multi-block (2x2) pipelined grid is exercised
    # even at these demo shapes (production defaults: block_m=64, block_n=128).
    y = sparse_matrix_equivariant_block(x, weights, block_m=16, block_n=64)
    y = jax.block_until_ready(y)

    y_ref = _reference(x, weights)
    assert y.shape == (N1, N2, DOUT)
    assert jnp.allclose(y, y_ref, atol=1e-3, rtol=1e-3), "mismatch vs reference"

    print("KERNEL_OK")
</pallas_src>

<mosaic_0001>
module attributes {stable_mosaic.version = 11 : i64} {
  func.func @_equivariant_tile_kernel(%arg0: i32, %arg1: i32, %arg2: memref<16x64x64xf32, #tpu.memory_space<vmem>>, %arg3: memref<64x128xf32, #tpu.memory_space<vmem>>, %arg4: memref<16x128xf32, #tpu.memory_space<vmem>>, %arg5: memref<64x128xf32, #tpu.memory_space<vmem>>, %arg6: memref<16x64x128xf32, #tpu.memory_space<vmem>>) attributes {dimension_semantics = [#tpu.dimension_semantics<parallel>, #tpu.dimension_semantics<parallel>], iteration_bounds = array<i64: 2, 2>, scalar_prefetch = 0 : i64, scratch_operands = 0 : i64, tpu.core_type = #tpu.core_type<tc>, window_params = [{transform_indices = @transform_0, window_bounds = array<i64: 16, 64, 64>}, {pipeline_mode = #tpu.pipeline_mode<synchronous>, transform_indices = @transform_1, window_bounds = array<i64: 64, 128>}, {transform_indices = @transform_2, window_bounds = array<i64: 16, 128>}, {transform_indices = @transform_3, window_bounds = array<i64: 64, 128>}, {transform_indices = @transform_4, window_bounds = array<i64: 16, 64, 128>}]} {
    %c0 = arith.constant 0 : index
    %c0_0 = arith.constant 0 : index
    %c0_1 = arith.constant 0 : index
    %0 = vector.load %arg2[%c0, %c0_0, %c0_1] : memref<16x64x64xf32, #tpu.memory_space<vmem>>, vector<16x64x64xf32>
    %1 = vector.shape_cast %0 : vector<16x64x64xf32> to vector<1024x64xf32>
    %c0_2 = arith.constant 0 : index
    %c0_3 = arith.constant 0 : index
    %2 = vector.load %arg3[%c0_2, %c0_3] : memref<64x128xf32, #tpu.memory_space<vmem>>, vector<64x128xf32>
    %cst = arith.constant dense<0.000000e+00> : vector<1024x128xf32>
    %3 = tpu.matmul %1, %2, %cst {dimension_numbers = #tpu.dot_dimension_numbers<[1], [0], [0], [1], [0, 0, 1, 1], [], []>} : vector<1024x64xf32>, vector<64x128xf32>, vector<1024x128xf32> -> vector<1024x128xf32>
    %4 = vector.shape_cast %3 : vector<1024x128xf32> to vector<16x64x128xf32>
    %c0_4 = arith.constant 0 : index
    %c0_5 = arith.constant 0 : index
    %5 = vector.load %arg4[%c0_4, %c0_5] : memref<16x128xf32, #tpu.memory_space<vmem>>, vector<16x128xf32>
    %6 = vector.shape_cast %5 : vector<16x128xf32> to vector<16x1x128xf32>
    %7 = vector.broadcast %6 : vector<16x1x128xf32> to vector<16x64x128xf32>
    %8 = arith.addf %4, %7 : vector<16x64x128xf32>
    %c0_6 = arith.constant 0 : index
    %c0_7 = arith.constant 0 : index
    %9 = vector.load %arg5[%c0_6, %c0_7] : memref<64x128xf32, #tpu.memory_space<vmem>>, vector<64x128xf32>
    %10 = vector.shape_cast %9 : vector<64x128xf32> to vector<1x64x128xf32>
    %11 = vector.broadcast %10 : vector<1x64x128xf32> to vector<16x64x128xf32>
    %12 = arith.addf %8, %11 : vector<16x64x128xf32>
    %c0_8 = arith.constant 0 : index
    %c0_9 = arith.constant 0 : index
    %c0_10 = arith.constant 0 : index
    %13 = vector.load %arg6[%c0_8, %c0_9, %c0_10] : memref<16x64x128xf32, #tpu.memory_space<vmem>>, vector<16x64x128xf32>
    tpu.vector_store %arg6[%c0_8, %c0_9, %c0_10], %12 {strides = array<i32>} : memref<16x64x128xf32, #tpu.memory_space<vmem>>, vector<16x64x128xf32>,
    return
  }
  func.func @transform_0(%arg0: i32, %arg1: i32) -> (i32, i32, i32) {
    %c0_i32 = arith.constant 0 : i32
    %c0_i32_0 = arith.constant 0 : i32
    return %arg0, %arg1, %c0_i32 : i32, i32, i32
  }
  func.func @transform_1(%arg0: i32, %arg1: i32) -> (i32, i32) {
    %c0_i32 = arith.constant 0 : i32
    %c0_i32_0 = arith.constant 0 : i32
    %c0_i32_1 = arith.constant 0 : i32
    return %c0_i32, %c0_i32_0 : i32, i32
  }
  func.func @transform_2(%arg0: i32, %arg1: i32) -> (i32, i32) {
    %c0_i32 = arith.constant 0 : i32
    %c0_i32_0 = arith.constant 0 : i32
    return %arg0, %c0_i32 : i32, i32
  }
  func.func @transform_3(%arg0: i32, %arg1: i32) -> (i32, i32) {
    %c0_i32 = arith.constant 0 : i32
    %c0_i32_0 = arith.constant 0 : i32
    return %arg1, %c0_i32 : i32, i32
  }
  func.func @transform_4(%arg0: i32, %arg1: i32) -> (i32, i32, i32) {
    %c0_i32 = arith.constant 0 : i32
    %c0_i32_0 = arith.constant 0 : i32
    return %arg0, %arg1, %c0_i32 : i32, i32, i32
  }
}

</mosaic_0001>

<bundles_post_ra>
// kernel: tpu_custom_call.1
= control target key start
LH: loop header
LB: loop body
LE: loop exit
PB: predicated region body
PF: predicated region fallthrough
CT: control target
= control target key end

     0   :  { %9 = vsyncpa [#allocation4], 0  ;;  %s4687_s0 = inlined_call_operand.vmem [shape: f32[32,128,64], index: 0, kind: input, shape index: {}]   ;;  %s4688_s1 = inlined_call_operand.vmem [shape: f32[64,128], index: 1, kind: input, shape index: {}]   ;;  %s4689_s2 = inlined_call_operand.vmem [shape: f32[32,128], index: 2, kind: input, shape index: {}]   ;;  %s4690_s3 = inlined_call_operand.vmem [shape: f32[128,128], index: 3, kind: input, shape index: {}]   ;;  %s4691_s4 = inlined_call_operand.hbm [shape: f32[32,128,128], index: 4, kind: output, shape index: {}]  }
   0x1   :  { %11 = vsyncpa [#allocation4 + $0x1], 0  ;;  %s3455_s15 = smov 0   ;;  %s3457_s16 = smov 0  }
   0x2   :  { %s3459_s17 = smov 0   ;;  %s3461_s18 = smov 0  }
   0x3   :  { %s3463_s19 = smov 0   ;;  %s3465_s20 = smov 0  }
   0x4   :  { %s3467_s21 = smov 0   ;;  %s3469_s22 = smov 0  }
   0x5 LB: > { %s2756_s23 = sadd.s32 4294967295, %s3421_s22   ;;  %s2757_s24 = sadd.s32 4294967294, %s3421_s22   ;;  %s3421_s22 = sphi %s3469_s22, %s17_s22   ;;  %s3417_s21 = sphi %s3467_s21, %s4701_s21   ;;  %s3413_s20 = sphi %s3465_s20, %s4700_s20   ;;  %s3409_s19 = sphi %s3463_s19, %s4699_s19   ;;  %s3405_s18 = sphi %s3461_s18, %s4698_s18   ;;  %s3401_s17 = sphi %s3459_s17, %s4697_s17   ;;  %s3397_s16 = sphi %s3457_s16, %s4696_s16   ;;  %s3393_s15 = sphi %s3455_s15, %s4695_s15  }
   0x6   : > { %s26_s25 = sadd.s32 1, %s3413_s20  ;;  %s29_s26 = sadd.s32 1, %s3417_s21 }
   0x7   : > { %p27_p0 = scmp.ge.s32.totalorder %s26_s25, 2  ;;  %p45_p1 = scmp.ne.s32.totalorder %s3401_s17, %s3397_s16 }
   0x8   : > { %p46_p2 = scmp.eq.s32.totalorder %s3421_s22, 0  ;;  %p150_p5 = scmp.eq.s32.totalorder %s2756_s23, 3 }
   0x9   : > { %s4703_s25 = smov (%p27_p0, %s26_s25), 0  ;;  %s4705_s26 = smov (!%p27_p0, %s29_s26), %s3417_s21 }
   0xa   : > { %s34_s27 = ssub.s32 %s3413_s20, %s4703_s25  ;;  %p3507_p3 = por %p46_p2, %p45_p1 }
   0xb   : > { %p31_p4 = scmp.ge.s32.totalorder %s4705_s26, 2  ;;  %p155_p6 = scmp.ne.s32.totalorder %s3397_s16, %s3393_s15 }
   0xc   : > { %p156_p7 = scmp.eq.s32.totalorder %s2757_s24, 3  ;;  %p3515_p8 = por %p150_p5, %p45_p1 }
   0xd   : > { %s4707_s26 = smov (%p31_p4, %s4705_s26), 0  ;;  %s38_s7 = sadd.s32 1, %s3401_s17 }
   0xe   : > { %p3519_p9 = por %p156_p7, %p155_p6  ;;  %s33_s5 = ssub.s32 %s3417_s21, %s4707_s26 }
   0xf   : > { %s35_s6 = sor.u32 %s34_s27, %s33_s5  ;;  %p2759_p11 = scmp.ge.s32.totalorder %s3421_s22, 4 }
  0x10   : > { %p36_p10 = scmp.eq.s32.totalorder %s35_s6, 0 }
  0x11   : > { %175 = sbr.rel (%p2759_p11) target bundleno = 93 (0x5d), region = 20 }
  0x12   : > { %s3527_s8 = scalar_select %p36_p10, %s3401_s17, %s38_s7  }
  0x16   : > { %178 = sbr.rel (!%p3507_p3) target bundleno = 93 (0x5d), region = 24  ;;  %s180_s9 = sand.u32 (%p3507_p3), 1, %s3401_s17  }
  0x17   : > { %s2762_s10 = sshll.u32 (%p3507_p3), %s3413_s20, 3  ;;  %s2760_s11 = sshll.u32 (%p3507_p3), %s180_s9, 10 }
  0x18   : > { %s2907_s12 = sshll.u32 (%p3507_p3), %s3417_s21, 8  ;;  %s3543_s28 = scalar_lea.vmem (%p3507_p3), [#allocation2], %s2760_s11 }
  0x19   : > { %s186_s13 = sadd.s32 (%p3507_p3), %s2907_s12, %s2762_s10 }
  0x1a   : > { %s2764_s14 = sshll.u32 (%p3507_p3), %s186_s13, 3 }
  0x1b   : > { %s3538_s27 = scalar_lea.vmem %s4687_s0, %s2764_s14 }
  0x1c   : > { %v471_v0 = vld [vmem:[%s3538_s27] sm:$0xff]  ;;  %v473_v1 = vld [vmem:[%s3538_s27 + $0x8] sm:$0xff]  ;;  %v475_v2 = vld [vmem:[%s3538_s27 + $0x10] sm:$0xff] }
  0x1d   : > { %472 = vst [vmem:[%s3543_s28] sm:$0xff] %v471_v0  ;;  %474 = vst [vmem:[%s3543_s28 + $0x8] sm:$0xff] %v473_v1  ;;  %v477_v3 = vld [vmem:[%s3538_s27 + $0x18] sm:$0xff]  ;;  %v479_v4 = vld [vmem:[%s3538_s27 + $0x20] sm:$0xff] }
  0x1e   : > { %476 = vst [vmem:[%s3543_s28 + $0x10] sm:$0xff] %v475_v2  ;;  %v481_v5 = vld [vmem:[%s3538_s27 + $0x28] sm:$0xff]  ;;  %478 = vst [vmem:[%s3543_s28 + $0x18] sm:$0xff] %v477_v3  ;;  %v483_v6 = vld [vmem:[%s3538_s27 + $0x30] sm:$0xff] }
  0x1f   : > { %480 = vst [vmem:[%s3543_s28 + $0x20] sm:$0xff] %v479_v4  ;;  %482 = vst [vmem:[%s3543_s28 + $0x28] sm:$0xff] %v481_v5  ;;  %v485_v7 = vld [vmem:[%s3538_s27 + $0x38] sm:$0xff]  ;;  %v487_v8 = vld [vmem:[%s3538_s27 + $0x80] sm:$0xff] }
  0x20   : > { %484 = vst [vmem:[%s3543_s28 + $0x30] sm:$0xff] %v483_v6  ;;  %486 = vst [vmem:[%s3543_s28 + $0x38] sm:$0xff] %v485_v7  ;;  %v489_v9 = vld [vmem:[%s3538_s27 + $0x88] sm:$0xff]  ;;  %v491_v10 = vld [vmem:[%s3538_s27 + $0x90] sm:$0xff] }
  0x21   : > { %488 = vst [vmem:[%s3543_s28 + $0x40] sm:$0xff] %v487_v8  ;;  %v493_v11 = vld [vmem:[%s3538_s27 + $0x98] sm:$0xff]  ;;  %490 = vst [vmem:[%s3543_s28 + $0x48] sm:$0xff] %v489_v9  ;;  %v495_v12 = vld [vmem:[%s3538_s27 + $0xa0] sm:$0xff] }
  0x22   : > { %492 = vst [vmem:[%s3543_s28 + $0x50] sm:$0xff] %v491_v10  ;;  %494 = vst [vmem:[%s3543_s28 + $0x58] sm:$0xff] %v493_v11  ;;  %v497_v13 = vld [vmem:[%s3538_s27 + $0xa8] sm:$0xff]  ;;  %v499_v14 = vld [vmem:[%s3538_s27 + $0xb0] sm:$0xff] }
  0x23   : > { %496 = vst [vmem:[%s3543_s28 + $0x60] sm:$0xff] %v495_v12  ;;  %498 = vst [vmem:[%s3543_s28 + $0x68] sm:$0xff] %v497_v13  ;;  %v501_v15 = vld [vmem:[%s3538_s27 + $0xb8] sm:$0xff]  ;;  %v503_v16 = vld [vmem:[%s3538_s27 + $0x100] sm:$0xff] }
  0x24   : > { %500 = vst [vmem:[%s3543_s28 + $0x70] sm:$0xff] %v499_v14  ;;  %v505_v17 = vld [vmem:[%s3538_s27 + $0x108] sm:$0xff]  ;;  %502 = vst [vmem:[%s3543_s28 + $0x78] sm:$0xff] %v501_v15  ;;  %v507_v18 = vld [vmem:[%s3538_s27 + $0x110] sm:$0xff] }
  0x25   : > { %504 = vst [vmem:[%s3543_s28 + $0x80] sm:$0xff] %v503_v16  ;;  %506 = vst [vmem:[%s3543_s28 + $0x88] sm:$0xff] %v505_v17  ;;  %v509_v19 = vld [vmem:[%s3538_s27 + $0x118] sm:$0xff]  ;;  %v511_v20 = vld [vmem:[%s3538_s27 + $0x120] sm:$0xff] }
  0x26   : > { %508 = vst [vmem:[%s3543_s28 + $0x90] sm:$0xff] %v507_v18  ;;  %510 = vst [vmem:[%s3543_s28 + $0x98] sm:$0xff] %v509_v19  ;;  %v513_v21 = vld [vmem:[%s3538_s27 + $0x128] sm:$0xff]  ;;  %v515_v22 = vld [vmem:[%s3538_s27 + $0x130] sm:$0xff] }
  0x27   : > { %512 = vst [vmem:[%s3543_s28 + $0xa0] sm:$0xff] %v511_v20  ;;  %v517_v23 = vld [vmem:[%s3538_s27 + $0x138] sm:$0xff]  ;;  %514 = vst [vmem:[%s3543_s28 + $0xa8] sm:$0xff] %v513_v21  ;;  %v519_v24 = vld [vmem:[%s3538_s27 + $0x180] sm:$0xff] }
  0x28   : > { %516 = vst [vmem:[%s3543_s28 + $0xb0] sm:$0xff] %v515_v22  ;;  %518 = vst [vmem:[%s3543_s28 + $0xb8] sm:$0xff] %v517_v23  ;;  %v521_v25 = vld [vmem:[%s3538_s27 + $0x188] sm:$0xff]  ;;  %v523_v26 = vld [vmem:[%s3538_s27 + $0x190] sm:$0xff] }
  0x29   : > { %520 = vst [vmem:[%s3543_s28 + $0xc0] sm:$0xff] %v519_v24  ;;  %522 = vst [vmem:[%s3543_s28 + $0xc8] sm:$0xff] %v521_v25  ;;  %v525_v27 = vld [vmem:[%s3538_s27 + $0x198] sm:$0xff]  ;;  %v527_v28 = vld [vmem:[%s3538_s27 + $0x1a0] sm:$0xff] }
  0x2a   : > { %524 = vst [vmem:[%s3543_s28 + $0xd0] sm:$0xff] %v523_v26  ;;  %v529_v29 = vld [vmem:[%s3538_s27 + $0x1a8] sm:$0xff]  ;;  %526 = vst [vmem:[%s3543_s28 + $0xd8] sm:$0xff] %v525_v27  ;;  %v531_v30 = vld [vmem:[%s3538_s27 + $0x1b0] sm:$0xff] }
  0x2b   : > { %528 = vst [vmem:[%s3543_s28 + $0xe0] sm:$0xff] %v527_v28  ;;  %530 = vst [vmem:[%s3543_s28 + $0xe8] sm:$0xff] %v529_v29  ;;  %v533_v31 = vld [vmem:[%s3538_s27 + $0x1b8] sm:$0xff]  ;;  %v535_v32 = vld [vmem:[%s3538_s27 + $0x200] sm:$0xff] }
  0x2c   : > { %532 = vst [vmem:[%s3543_s28 + $0xf0] sm:$0xff] %v531_v30  ;;  %534 = vst [vmem:[%s3543_s28 + $0xf8] sm:$0xff] %v533_v31  ;;  %v537_v33 = vld [vmem:[%s3538_s27 + $0x208] sm:$0xff]  ;;  %v539_v34 = vld [vmem:[%s3538_s27 + $0x210] sm:$0xff] }
  0x2d   : > { %536 = vst [vmem:[%s3543_s28 + $0x100] sm:$0xff] %v535_v32  ;;  %v541_v35 = vld [vmem:[%s3538_s27 + $0x218] sm:$0xff]  ;;  %538 = vst [vmem:[%s3543_s28 + $0x108] sm:$0xff] %v537_v33  ;;  %v543_v36 = vld [vmem:[%s3538_s27 + $0x220] sm:$0xff] }
  0x2e   : > { %540 = vst [vmem:[%s3543_s28 + $0x110] sm:$0xff] %v539_v34  ;;  %542 = vst [vmem:[%s3543_s28 + $0x118] sm:$0xff] %v541_v35  ;;  %v545_v37 = vld [vmem:[%s3538_s27 + $0x228] sm:$0xff]  ;;  %v547_v38 = vld [vmem:[%s3538_s27 + $0x230] sm:$0xff] }
  0x2f   : > { %544 = vst [vmem:[%s3543_s28 + $0x120] sm:$0xff] %v543_v36  ;;  %546 = vst [vmem:[%s3543_s28 + $0x128] sm:$0xff] %v545_v37  ;;  %v549_v39 = vld [vmem:[%s3538_s27 + $0x238] sm:$0xff]  ;;  %v551_v40 = vld [vmem:[%s3538_s27 + $0x280] sm:$0xff] }
  0x30   : > { %548 = vst [vmem:[%s3543_s28 + $0x130] sm:$0xff] %v547_v38  ;;  %v553_v41 = vld [vmem:[%s3538_s27 + $0x288] sm:$0xff]  ;;  %550 = vst [vmem:[%s3543_s28 + $0x138] sm:$0xff] %v549_v39  ;;  %v555_v42 = vld [vmem:[%s3538_s27 + $0x290] sm:$0xff] }
  0x31   : > { %552 = vst [vmem:[%s3543_s28 + $0x140] sm:$0xff] %v551_v40  ;;  %554 = vst [vmem:[%s3543_s28 + $0x148] sm:$0xff] %v553_v41  ;;  %v557_v43 = vld [vmem:[%s3538_s27 + $0x298] sm:$0xff]  ;;  %v559_v44 = vld [vmem:[%s3538_s27 + $0x2a0] sm:$0xff] }
  0x32   : > { %556 = vst [vmem:[%s3543_s28 + $0x150] sm:$0xff] %v555_v42  ;;  %558 = vst [vmem:[%s3543_s28 + $0x158] sm:$0xff] %v557_v43  ;;  %v561_v45 = vld [vmem:[%s3538_s27 + $0x2a8] sm:$0xff]  ;;  %v563_v46 = vld [vmem:[%s3538_s27 + $0x2b0] sm:$0xff] }
  0x33   : > { %560 = vst [vmem:[%s3543_s28 + $0x160] sm:$0xff] %v559_v44  ;;  %v565_v47 = vld [vmem:[%s3538_s27 + $0x2b8] sm:$0xff]  ;;  %562 = vst [vmem:[%s3543_s28 + $0x168] sm:$0xff] %v561_v45  ;;  %v567_v48 = vld [vmem:[%s3538_s27 + $0x300] sm:$0xff] }
  0x34   : > { %564 = vst [vmem:[%s3543_s28 + $0x170] sm:$0xff] %v563_v46  ;;  %566 = vst [vmem:[%s3543_s28 + $0x178] sm:$0xff] %v565_v47  ;;  %v569_v49 = vld [vmem:[%s3538_s27 + $0x308] sm:$0xff]  ;;  %v571_v50 = vld [vmem:[%s3538_s27 + $0x310] sm:$0xff] }
  0x35   : > { %568 = vst [vmem:[%s3543_s28 + $0x180] sm:$0xff] %v567_v48  ;;  %570 = vst [vmem:[%s3543_s28 + $0x188] sm:$0xff] %v569_v49  ;;  %v573_v51 = vld [vmem:[%s3538_s27 + $0x318] sm:$0xff]  ;;  %v575_v52 = vld [vmem:[%s3538_s27 + $0x320] sm:$0xff] }
  0x36   : > { %572 = vst [vmem:[%s3543_s28 + $0x190] sm:$0xff] %v571_v50  ;;  %v577_v53 = vld [vmem:[%s3538_s27 + $0x328] sm:$0xff]  ;;  %574 = vst [vmem:[%s3543_s28 + $0x198] sm:$0xff] %v573_v51  ;;  %v579_v54 = vld [vmem:[%s3538_s27 + $0x330] sm:$0xff] }
  0x37   : > { %576 = vst [vmem:[%s3543_s28 + $0x1a0] sm:$0xff] %v575_v52  ;;  %578 = vst [vmem:[%s3543_s28 + $0x1a8] sm:$0xff] %v577_v53  ;;  %v581_v55 = vld [vmem:[%s3538_s27 + $0x338] sm:$0xff]  ;;  %v583_v56 = vld [vmem:[%s3538_s27 + $0x380] sm:$0xff] }
  0x38   : > { %580 = vst [vmem:[%s3543_s28 + $0x1b0] sm:$0xff] %v579_v54  ;;  %582 = vst [vmem:[%s3543_s28 + $0x1b8] sm:$0xff] %v581_v55  ;;  %v585_v57 = vld [vmem:[%s3538_s27 + $0x388] sm:$0xff]  ;;  %v587_v58 = vld [vmem:[%s3538_s27 + $0x390] sm:$0xff] }
  0x39   : > { %584 = vst [vmem:[%s3543_s28 + $0x1c0] sm:$0xff] %v583_v56  ;;  %v589_v59 = vld [vmem:[%s3538_s27 + $0x398] sm:$0xff]  ;;  %586 = vst [vmem:[%s3543_s28 + $0x1c8] sm:$0xff] %v585_v57  ;;  %v591_v60 = vld [vmem:[%s3538_s27 + $0x3a0] sm:$0xff] }
  0x3a   : > { %588 = vst [vmem:[%s3543_s28 + $0x1d0] sm:$0xff] %v587_v58  ;;  %590 = vst [vmem:[%s3543_s28 + $0x1d8] sm:$0xff] %v589_v59  ;;  %v593_v61 = vld [vmem:[%s3538_s27 + $0x3a8] sm:$0xff]  ;;  %v595_v62 = vld [vmem:[%s3538_s27 + $0x3b0] sm:$0xff] }
  0x3b   : > { %592 = vst [vmem:[%s3543_s28 + $0x1e0] sm:$0xff] %v591_v60  ;;  %594 = vst [vmem:[%s3543_s28 + $0x1e8] sm:$0xff] %v593_v61  ;;  %v597_v63 = vld [vmem:[%s3538_s27 + $0x3b8] sm:$0xff]  ;;  %v599_v0 = vld [vmem:[%s3538_s27 + $0x400] sm:$0xff] }
  0x3c   : > { %596 = vst [vmem:[%s3543_s28 + $0x1f0] sm:$0xff] %v595_v62  ;;  %v601_v1 = vld [vmem:[%s3538_s27 + $0x408] sm:$0xff]  ;;  %598 = vst [vmem:[%s3543_s28 + $0x1f8] sm:$0xff] %v597_v63  ;;  %v603_v2 = vld [vmem:[%s3538_s27 + $0x410] sm:$0xff] }
  0x3d   : > { %600 = vst [vmem:[%s3543_s28 + $0x200] sm:$0xff] %v599_v0  ;;  %602 = vst [vmem:[%s3543_s28 + $0x208] sm:$0xff] %v601_v1  ;;  %v605_v3 = vld [vmem:[%s3538_s27 + $0x418] sm:$0xff]  ;;  %v607_v4 = vld [vmem:[%s3538_s27 + $0x420] sm:$0xff] }
  0x3e   : > { %604 = vst [vmem:[%s3543_s28 + $0x210] sm:$0xff] %v603_v2  ;;  %606 = vst [vmem:[%s3543_s28 + $0x218] sm:$0xff] %v605_v3  ;;  %v609_v5 = vld [vmem:[%s3538_s27 + $0x428] sm:$0xff]  ;;  %v611_v6 = vld [vmem:[%s3538_s27 + $0x430] sm:$0xff] }
  0x3f   : > { %608 = vst [vmem:[%s3543_s28 + $0x220] sm:$0xff] %v607_v4  ;;  %v613_v7 = vld [vmem:[%s3538_s27 + $0x438] sm:$0xff]  ;;  %610 = vst [vmem:[%s3543_s28 + $0x228] sm:$0xff] %v609_v5  ;;  %v615_v8 = vld [vmem:[%s3538_s27 + $0x480] sm:$0xff] }
  0x40   : > { %612 = vst [vmem:[%s3543_s28 + $0x230] sm:$0xff] %v611_v6  ;;  %614 = vst [vmem:[%s3543_s28 + $0x238] sm:$0xff] %v613_v7  ;;  %v617_v9 = vld [vmem:[%s3538_s27 + $0x488] sm:$0xff]  ;;  %v619_v10 = vld [vmem:[%s3538_s27 + $0x490] sm:$0xff] }
  0x41   : > { %616 = vst [vmem:[%s3543_s28 + $0x240] sm:$0xff] %v615_v8  ;;  %618 = vst [vmem:[%s3543_s28 + $0x248] sm:$0xff] %v617_v9  ;;  %v621_v11 = vld [vmem:[%s3538_s27 + $0x498] sm:$0xff]  ;;  %v623_v12 = vld [vmem:[%s3538_s27 + $0x4a0] sm:$0xff] }
  0x42   : > { %620 = vst [vmem:[%s3543_s28 + $0x250] sm:$0xff] %v619_v10  ;;  %v625_v13 = vld [vmem:[%s3538_s27 + $0x4a8] sm:$0xff]  ;;  %622 = vst [vmem:[%s3543_s28 + $0x258] sm:$0xff] %v621_v11  ;;  %v627_v14 = vld [vmem:[%s3538_s27 + $0x4b0] sm:$0xff] }
  0x43   : > { %624 = vst [vmem:[%s3543_s28 + $0x260] sm:$0xff] %v623_v12  ;;  %626 = vst [vmem:[%s3543_s28 + $0x268] sm:$0xff] %v625_v13  ;;  %v629_v15 = vld [vmem:[%s3538_s27 + $0x4b8] sm:$0xff]  ;;  %v631_v16 = vld [vmem:[%s3538_s27 + $0x500] sm:$0xff] }
  0x44   : > { %628 = vst [vmem:[%s3543_s28 + $0x270] sm:$0xff] %v627_v14  ;;  %630 = vst [vmem:[%s3543_s28 + $0x278] sm:$0xff] %v629_v15  ;;  %v633_v17 = vld [vmem:[%s3538_s27 + $0x508] sm:$0xff]  ;;  %v635_v18 = vld [vmem:[%s3538_s27 + $0x510] sm:$0xff] }
  0x45   : > { %632 = vst [vmem:[%s3543_s28 + $0x280] sm:$0xff] %v631_v16  ;;  %v637_v19 = vld [vmem:[%s3538_s27 + $0x518] sm:$0xff]  ;;  %634 = vst [vmem:[%s3543_s28 + $0x288] sm:$0xff] %v633_v17  ;;  %v639_v20 = vld [vmem:[%s3538_s27 + $0x520] sm:$0xff] }
  0x46   : > { %636 = vst [vmem:[%s3543_s28 + $0x290] sm:$0xff] %v635_v18  ;;  %638 = vst [vmem:[%s3543_s28 + $0x298] sm:$0xff] %v637_v19  ;;  %v641_v21 = vld [vmem:[%s3538_s27 + $0x528] sm:$0xff]  ;;  %v643_v22 = vld [vmem:[%s3538_s27 + $0x530] sm:$0xff] }
  0x47   : > { %640 = vst [vmem:[%s3543_s28 + $0x2a0] sm:$0xff] %v639_v20  ;;  %642 = vst [vmem:[%s3543_s28 + $0x2a8] sm:$0xff] %v641_v21  ;;  %v645_v23 = vld [vmem:[%s3538_s27 + $0x538] sm:$0xff]  ;;  %v647_v24 = vld [vmem:[%s3538_s27 + $0x580] sm:$0xff] }
  0x48   : > { %644 = vst [vmem:[%s3543_s28 + $0x2b0] sm:$0xff] %v643_v22  ;;  %v649_v25 = vld [vmem:[%s3538_s27 + $0x588] sm:$0xff]  ;;  %646 = vst [vmem:[%s3543_s28 + $0x2b8] sm:$0xff] %v645_v23  ;;  %v651_v26 = vld [vmem:[%s3538_s27 + $0x590] sm:$0xff] }
  0x49   : > { %648 = vst [vmem:[%s3543_s28 + $0x2c0] sm:$0xff] %v647_v24  ;;  %650 = vst [vmem:[%s3543_s28 + $0x2c8] sm:$0xff] %v649_v25  ;;  %v653_v27 = vld [vmem:[%s3538_s27 + $0x598] sm:$0xff]  ;;  %v655_v28 = vld [vmem:[%s3538_s27 + $0x5a0] sm:$0xff] }
  0x4a   : > { %652 = vst [vmem:[%s3543_s28 + $0x2d0] sm:$0xff] %v651_v26  ;;  %654 = vst [vmem:[%s3543_s28 + $0x2d8] sm:$0xff] %v653_v27  ;;  %v657_v29 = vld [vmem:[%s3538_s27 + $0x5a8] sm:$0xff]  ;;  %v659_v30 = vld [vmem:[%s3538_s27 + $0x5b0] sm:$0xff] }
  0x4b   : > { %656 = vst [vmem:[%s3543_s28 + $0x2e0] sm:$0xff] %v655_v28  ;;  %v661_v31 = vld [vmem:[%s3538_s27 + $0x5b8] sm:$0xff]  ;;  %658 = vst [vmem:[%s3543_s28 + $0x2e8] sm:$0xff] %v657_v29  ;;  %v663_v32 = vld [vmem:[%s3538_s27 + $0x600] sm:$0xff] }
  0x4c   : > { %660 = vst [vmem:[%s3543_s28 + $0x2f0] sm:$0xff] %v659_v30  ;;  %662 = vst [vmem:[%s3543_s28 + $0x2f8] sm:$0xff] %v661_v31  ;;  %v665_v33 = vld [vmem:[%s3538_s27 + $0x608] sm:$0xff]  ;;  %v667_v34 = vld [vmem:[%s3538_s27 + $0x610] sm:$0xff] }
  0x4d   : > { %664 = vst [vmem:[%s3543_s28 + $0x300] sm:$0xff] %v663_v32  ;;  %666 = vst [vmem:[%s3543_s28 + $0x308] sm:$0xff] %v665_v33  ;;  %v669_v35 = vld [vmem:[%s3538_s27 + $0x618] sm:$0xff]  ;;  %v671_v36 = vld [vmem:[%s3538_s27 + $0x620] sm:$0xff] }
  0x4e   : > { %668 = vst [vmem:[%s3543_s28 + $0x310] sm:$0xff] %v667_v34  ;;  %v673_v37 = vld [vmem:[%s3538_s27 + $0x628] sm:$0xff]  ;;  %670 = vst [vmem:[%s3543_s28 + $0x318] sm:$0xff] %v669_v35  ;;  %v675_v38 = vld [vmem:[%s3538_s27 + $0x630] sm:$0xff] }
  0x4f   : > { %672 = vst [vmem:[%s3543_s28 + $0x320] sm:$0xff] %v671_v36  ;;  %674 = vst [vmem:[%s3543_s28 + $0x328] sm:$0xff] %v673_v37  ;;  %v677_v39 = vld [vmem:[%s3538_s27 + $0x638] sm:$0xff]  ;;  %v679_v40 = vld [vmem:[%s3538_s27 + $0x680] sm:$0xff] }
  0x50   : > { %676 = vst [vmem:[%s3543_s28 + $0x330] sm:$0xff] %v675_v38  ;;  %678 = vst [vmem:[%s3543_s28 + $0x338] sm:$0xff] %v677_v39  ;;  %v681_v41 = vld [vmem:[%s3538_s27 + $0x688] sm:$0xff]  ;;  %v683_v42 = vld [vmem:[%s3538_s27 + $0x690] sm:$0xff] }
  0x51   : > { %680 = vst [vmem:[%s3543_s28 + $0x340] sm:$0xff] %v679_v40  ;;  %v685_v43 = vld [vmem:[%s3538_s27 + $0x698] sm:$0xff]  ;;  %682 = vst [vmem:[%s3543_s28 + $0x348] sm:$0xff] %v681_v41  ;;  %v687_v44 = vld [vmem:[%s3538_s27 + $0x6a0] sm:$0xff] }
  0x52   : > { %684 = vst [vmem:[%s3543_s28 + $0x350] sm:$0xff] %v683_v42  ;;  %686 = vst [vmem:[%s3543_s28 + $0x358] sm:$0xff] %v685_v43  ;;  %v689_v45 = vld [vmem:[%s3538_s27 + $0x6a8] sm:$0xff]  ;;  %v691_v46 = vld [vmem:[%s3538_s27 + $0x6b0] sm:$0xff] }
  0x53   : > { %688 = vst [vmem:[%s3543_s28 + $0x360] sm:$0xff] %v687_v44  ;;  %690 = vst [vmem:[%s3543_s28 + $0x368] sm:$0xff] %v689_v45  ;;  %v693_v47 = vld [vmem:[%s3538_s27 + $0x6b8] sm:$0xff]  ;;  %v695_v48 = vld [vmem:[%s3538_s27 + $0x700] sm:$0xff] }
  0x54   : > { %692 = vst [vmem:[%s3543_s28 + $0x370] sm:$0xff] %v691_v46  ;;  %v697_v49 = vld [vmem:[%s3538_s27 + $0x708] sm:$0xff]  ;;  %694 = vst [vmem:[%s3543_s28 + $0x378] sm:$0xff] %v693_v47  ;;  %v699_v50 = vld [vmem:[%s3538_s27 + $0x710] sm:$0xff] }
  0x55   : > { %696 = vst [vmem:[%s3543_s28 + $0x380] sm:$0xff] %v695_v48  ;;  %698 = vst [vmem:[%s3543_s28 + $0x388] sm:$0xff] %v697_v49  ;;  %v701_v51 = vld [vmem:[%s3538_s27 + $0x718] sm:$0xff]  ;;  %v703_v52 = vld [vmem:[%s3538_s27 + $0x720] sm:$0xff] }
  0x56   : > { %700 = vst [vmem:[%s3543_s28 + $0x390] sm:$0xff] %v699_v50  ;;  %702 = vst [vmem:[%s3543_s28 + $0x398] sm:$0xff] %v701_v51  ;;  %v705_v53 = vld [vmem:[%s3538_s27 + $0x728] sm:$0xff]  ;;  %v707_v54 = vld [vmem:[%s3538_s27 + $0x730] sm:$0xff] }
  0x57   : > { %704 = vst [vmem:[%s3543_s28 + $0x3a0] sm:$0xff] %v703_v52  ;;  %v709_v55 = vld [vmem:[%s3538_s27 + $0x738] sm:$0xff]  ;;  %706 = vst [vmem:[%s3543_s28 + $0x3a8] sm:$0xff] %v705_v53  ;;  %v711_v56 = vld [vmem:[%s3538_s27 + $0x780] sm:$0xff] }
  0x58   : > { %708 = vst [vmem:[%s3543_s28 + $0x3b0] sm:$0xff] %v707_v54  ;;  %710 = vst [vmem:[%s3543_s28 + $0x3b8] sm:$0xff] %v709_v55  ;;  %v713_v57 = vld [vmem:[%s3538_s27 + $0x788] sm:$0xff]  ;;  %v715_v58 = vld [vmem:[%s3538_s27 + $0x790] sm:$0xff] }
  0x59   : > { %712 = vst [vmem:[%s3543_s28 + $0x3c0] sm:$0xff] %v711_v56  ;;  %714 = vst [vmem:[%s3543_s28 + $0x3c8] sm:$0xff] %v713_v57  ;;  %v717_v59 = vld [vmem:[%s3538_s27 + $0x798] sm:$0xff]  ;;  %v719_v60 = vld [vmem:[%s3538_s27 + $0x7a0] sm:$0xff] }
  0x5a   : > { %716 = vst [vmem:[%s3543_s28 + $0x3d0] sm:$0xff] %v715_v58  ;;  %v721_v61 = vld [vmem:[%s3538_s27 + $0x7a8] sm:$0xff]  ;;  %718 = vst [vmem:[%s3543_s28 + $0x3d8] sm:$0xff] %v717_v59  ;;  %v723_v62 = vld [vmem:[%s3538_s27 + $0x7b0] sm:$0xff] }
  0x5b   : > { %720 = vst [vmem:[%s3543_s28 + $0x3e0] sm:$0xff] %v719_v60  ;;  %722 = vst [vmem:[%s3543_s28 + $0x3e8] sm:$0xff] %v721_v61  ;;  %v725_v63 = vld [vmem:[%s3538_s27 + $0x7b8] sm:$0xff] }
  0x5c   : > { %724 = vst [vmem:[%s3543_s28 + $0x3f0] sm:$0xff] %v723_v62  ;;  %726 = vst [vmem:[%s3543_s28 + $0x3f8] sm:$0xff] %v725_v63 }
  0x5d PF: > { %p2765_p12 = scmp.ge.s32.totalorder %s3421_s22, 1  ;;  %p749_p13 = scmp.lt.s32.totalorder %s3421_s22, 5 }
  0x5f   : > { %p750_p0 = pnand %p2765_p12, %p749_p13 }
  0x60   : > { %s756_s10 = sand.u32 (!%p750_p0), 1, %s3397_s16   ;;  %s2768_s13 = sshll.u32 (!%p750_p0), %s3409_s19, 1 }
  0x61   : > { %753 = sbr.rel (%p750_p0) target bundleno = 454 (0x1c6), region = 70  ;;  %s3821_s5 = sshll.u32 (!%p750_p0), %s756_s10, 10 }
  0x62   : > { %s3830_s12 = scalar_lea.vmem (!%p750_p0), [#allocation2], %s3821_s5  ;;  %p794_p1 = scmp.lt.s32.totalorder (!%p750_p0), %s2768_s13, 3 }
  0x63   : > { %s4093_s28 = sshll.u32 (!%p750_p0), %s3405_s18, 3 }
  0x64   : > { %p800_p2 = scmp.lt.s32.totalorder (!%p750_p0), %s4093_s28, 15 }
  0x66   : > { %v942_v0 = vld [vmem:[%s4688_s1 + $0x38] sm:$0xff]  ;;  %v941_v1 = vld [vmem:[%s4688_s1 + $0x30] sm:$0xff]  ;;  %v940_v2 = vld [vmem:[%s4688_s1 + $0x28] sm:$0xff]  ;;  %vm943_vm0 = vcmask 523264   ;;  %s4709_s13 = smov (!%p794_p1, %s2768_s13), 3 }
  0x67   : > { %3045 = vmatprep.subr.mxu0 %v942_v0  ;;  %3253 = vmatprep.subr.mxu1 %v942_v0  ;;  %v939_v3 = vld [vmem:[%s4688_s1 + $0x20] sm:$0xff]  ;;  %v938_v4 = vld [vmem:[%s4688_s1 + $0x18] sm:$0xff]  ;;  %v937_v5 = vld [vmem:[%s4688_s1 + $0x10] sm:$0xff]  ;;  %s2769_s14 = sshll.u32 %s4709_s13, 3 }
  0x68   : > { %3046 = vmatpush3.msra.mxu0 %v942_v0  ;;  %3261 = vmatpush3.msra.mxu1 %v942_v0  ;;  %v936_v6 = vld [vmem:[%s4688_s1 + $0x8] sm:$0xff]  ;;  %v935_v7 = vld [vmem:[%s4688_s1] sm:$0xff]  ;;  %v809_v12 = vld [vmem:[%s3830_s12 + $0x10] sm:$0xff]  ;;  %s797_s27 = scalar_lea.vmem %s4689_s2, %s2769_s14 }
  0x69   : > { %3047 = vmatprep.subr.mxu0 %v941_v1  ;;  %3254 = vmatprep.subr.mxu1 %v941_v1  ;;  %v807_v8 = vld [vmem:[%s3830_s12] sm:$0xff]  ;;  %v808_v10 = vld [vmem:[%s3830_s12 + $0x8] sm:$0xff]  ;;  %v873_v13 = vld [vmem:[%s3830_s12 + $0x210] sm:$0xff]  ;;  %s801_s6 = scalar_select %p800_p2, %s4093_s28, 15 }
  0x6a   : > { %3048 = vmatpush3.msra.mxu0 %v941_v1  ;;  %3262 = vmatpush3.msra.mxu1 %v941_v1  ;;  %v871_v9 = vld [vmem:[%s3830_s12 + $0x200] sm:$0xff]  ;;  %v872_v11 = vld [vmem:[%s3830_s12 + $0x208] sm:$0xff]  ;;  %v810_v14 = vld [vmem:[%s3830_s12 + $0x18] sm:$0xff] }
  0x6b   : > { %3049 = vmatprep.subr.mxu0 %v940_v2  ;;  %3255 = vmatprep.subr.mxu1 %v940_v2  ;;  %v874_v15 = vld [vmem:[%s3830_s12 + $0x218] sm:$0xff]  ;;  %v811_v16 = vld [vmem:[%s3830_s12 + $0x20] sm:$0xff]  ;;  %v812_v18 = vld [vmem:[%s3830_s12 + $0x28] sm:$0xff]  ;;  %s2771_s18 = sshll.u32 %s801_s6, 3 }
  0x6c   : > { %3050 = vmatpush3.msra.mxu0 %v940_v2  ;;  %3263 = vmatpush3.msra.mxu1 %v940_v2  ;;  %v875_v17 = vld [vmem:[%s3830_s12 + $0x220] sm:$0xff]  ;;  %v876_v19 = vld [vmem:[%s3830_s12 + $0x228] sm:$0xff]  ;;  %v813_v20 = vld [vmem:[%s3830_s12 + $0x30] sm:$0xff]  ;;  %s4118_s11 = scalar_lea.vmem %s4690_s3, %s2771_s18 }
  0x6d   : > { %3051 = vmatprep.subr.mxu0 %v939_v3  ;;  %3256 = vmatprep.subr.mxu1 %v939_v3  ;;  %v877_v21 = vld [vmem:[%s3830_s12 + $0x230] sm:$0xff]  ;;  %v814_v22 = vld [vmem:[%s3830_s12 + $0x38] sm:$0xff]  ;;  %v815_v24 = vld [vmem:[%s3830_s12 + $0x40] sm:$0xff] }
  0x6e   : > { %3052 = vmatpush3.msra.mxu0 %v939_v3  ;;  %3264 = vmatpush3.msra.mxu1 %v939_v3  ;;  %v878_v23 = vld [vmem:[%s3830_s12 + $0x238] sm:$0xff]  ;;  %v879_v25 = vld [vmem:[%s3830_s12 + $0x240] sm:$0xff]  ;;  %v816_v26 = vld [vmem:[%s3830_s12 + $0x48] sm:$0xff] }
  0x6f   : > { %3053 = vmatprep.subr.mxu0 %v938_v4  ;;  %3257 = vmatprep.subr.mxu1 %v938_v4  ;;  %v880_v27 = vld [vmem:[%s3830_s12 + $0x248] sm:$0xff]  ;;  %v817_v28 = vld [vmem:[%s3830_s12 + $0x50] sm:$0xff]  ;;  %v818_v30 = vld [vmem:[%s3830_s12 + $0x58] sm:$0xff] }
  0x70   : > { %3054 = vmatpush3.msra.mxu0 %v938_v4  ;;  %3265 = vmatpush3.msra.mxu1 %v938_v4  ;;  %v881_v29 = vld [vmem:[%s3830_s12 + $0x250] sm:$0xff]  ;;  %v882_v31 = vld [vmem:[%s3830_s12 + $0x258] sm:$0xff]  ;;  %v819_v32 = vld [vmem:[%s3830_s12 + $0x60] sm:$0xff] }
  0x71   : > { %3055 = vmatprep.subr.mxu0 %v937_v5  ;;  %3258 = vmatprep.subr.mxu1 %v937_v5  ;;  %v883_v33 = vld [vmem:[%s3830_s12 + $0x260] sm:$0xff]  ;;  %v820_v34 = vld [vmem:[%s3830_s12 + $0x68] sm:$0xff]  ;;  %v821_v36 = vld [vmem:[%s3830_s12 + $0x70] sm:$0xff] }
  0x72   : > { %3056 = vmatpush3.msra.mxu0 %v937_v5  ;;  %3266 = vmatpush3.msra.mxu1 %v937_v5  ;;  %v884_v35 = vld [vmem:[%s3830_s12 + $0x268] sm:$0xff]  ;;  %v885_v37 = vld [vmem:[%s3830_s12 + $0x270] sm:$0xff]  ;;  %v822_v38 = vld [vmem:[%s3830_s12 + $0x78] sm:$0xff] }
  0x73   : > { %3057 = vmatprep.subr.mxu0 %v936_v6  ;;  %3259 = vmatprep.subr.mxu1 %v936_v6  ;;  %v886_v39 = vld [vmem:[%s3830_s12 + $0x278] sm:$0xff]  ;;  %v823_v40 = vld [vmem:[%s3830_s12 + $0x80] sm:$0xff]  ;;  %v824_v42 = vld [vmem:[%s3830_s12 + $0x88] sm:$0xff] }
  0x74   : > { %3058 = vmatpush3.msra.mxu0 %v936_v6  ;;  %3267 = vmatpush3.msra.mxu1 %v936_v6  ;;  %v887_v41 = vld [vmem:[%s3830_s12 + $0x280] sm:$0xff]  ;;  %v888_v43 = vld [vmem:[%s3830_s12 + $0x288] sm:$0xff]  ;;  %v825_v44 = vld [vmem:[%s3830_s12 + $0x90] sm:$0xff] }
  0x75   : > { %3059 = vmatprep.subr.mxu0 %v935_v7  ;;  %3260 = vmatprep.subr.mxu1 %v935_v7  ;;  %v889_v45 = vld [vmem:[%s3830_s12 + $0x290] sm:$0xff]  ;;  %v826_v46 = vld [vmem:[%s3830_s12 + $0x98] sm:$0xff]  ;;  %v827_v48 = vld [vmem:[%s3830_s12 + $0xa0] sm:$0xff] }
  0x76   : > { %3060 = vmatpush3.msra.mxu0 %v935_v7  ;;  %3268 = vmatpush3.msra.mxu1 %v935_v7  ;;  %v890_v47 = vld [vmem:[%s3830_s12 + $0x298] sm:$0xff]  ;;  %v891_v49 = vld [vmem:[%s3830_s12 + $0x2a0] sm:$0xff]  ;;  %v828_v50 = vld [vmem:[%s3830_s12 + $0xa8] sm:$0xff] }
  0x77   : > { %3061 = vmatprep.mubr.msk.f32.mxu0 %vm943_vm0, %v807_v8  ;;  %3157 = vmatprep.mubr.msk.f32.mxu1 %vm943_vm0, %v871_v9  ;;  %v892_v51 = vld [vmem:[%s3830_s12 + $0x2a8] sm:$0xff]  ;;  %v829_v52 = vld [vmem:[%s3830_s12 + $0xb0] sm:$0xff]  ;;  %v830_v54 = vld [vmem:[%s3830_s12 + $0xb8] sm:$0xff] }
  0x78   : > { %3062 = vmatmul.mubr.msk.f32.vlgmr.msra.gmra.mxu0 %vm943_vm0, %v808_v10  ;;  %3158 = vmatmul.mubr.msk.f32.vlgmr.msra.gmra.mxu1 %vm943_vm0, %v872_v11  ;;  %v893_v53 = vld [vmem:[%s3830_s12 + $0x2b0] sm:$0xff]  ;;  %v894_v55 = vld [vmem:[%s3830_s12 + $0x2b8] sm:$0xff]  ;;  %v831_v56 = vld [vmem:[%s3830_s12 + $0xc0] sm:$0xff] }
  0x79   : > { %3064 = vmatprep.mubr.msk.f32.mxu0 %vm943_vm0, %v809_v12  ;;  %3160 = vmatprep.mubr.msk.f32.mxu1 %vm943_vm0, %v873_v13  ;;  %v895_v57 = vld [vmem:[%s3830_s12 + $0x2c0] sm:$0xff]  ;;  %v832_v58 = vld [vmem:[%s3830_s12 + $0xc8] sm:$0xff]  ;;  %v833_v60 = vld [vmem:[%s3830_s12 + $0xd0] sm:$0xff] }
  0x7a   : > { %v896_v59 = vld [vmem:[%s3830_s12 + $0x2c8] sm:$0xff]  ;;  %v897_v61 = vld [vmem:[%s3830_s12 + $0x2d0] sm:$0xff]  ;;  %v834_v62 = vld [vmem:[%s3830_s12 + $0xd8] sm:$0xff] }
  0x7b   : > { %v898_v63 = vld [vmem:[%s3830_s12 + $0x2d8] sm:$0xff]  ;;  %v835_v0 = vld [vmem:[%s3830_s12 + $0xe0] sm:$0xff]  ;;  %v836_v2 = vld [vmem:[%s3830_s12 + $0xe8] sm:$0xff] }
  0x7c   : > { %3065 = vmatmul.mubr.msk.f32.gmra.mxu0 %vm943_vm0, %v810_v14  ;;  %3161 = vmatmul.mubr.msk.f32.gmra.mxu1 %vm943_vm0, %v874_v15  ;;  %v899_v1 = vld [vmem:[%s3830_s12 + $0x2e0] sm:$0xff]  ;;  %v900_v3 = vld [vmem:[%s3830_s12 + $0x2e8] sm:$0xff]  ;;  %v837_v4 = vld [vmem:[%s3830_s12 + $0xf0] sm:$0xff] }
  0x7d   : > { %3067 = vmatprep.mubr.msk.f32.mxu0 %vm943_vm0, %v811_v16  ;;  %3163 = vmatprep.mubr.msk.f32.mxu1 %vm943_vm0, %v875_v17  ;;  %v901_v5 = vld [vmem:[%s3830_s12 + $0x2f0] sm:$0xff]  ;;  %v838_v6 = vld [vmem:[%s3830_s12 + $0xf8] sm:$0xff]  ;;  %v839_v8 = vld [vmem:[%s3830_s12 + $0x100] sm:$0xff] }
  0x7e   : > { %v902_v7 = vld [vmem:[%s3830_s12 + $0x2f8] sm:$0xff]  ;;  %v903_v9 = vld [vmem:[%s3830_s12 + $0x300] sm:$0xff]  ;;  %v840_v10 = vld [vmem:[%s3830_s12 + $0x108] sm:$0xff] }
  0x7f   : > { %v904_v11 = vld [vmem:[%s3830_s12 + $0x308] sm:$0xff]  ;;  %v841_v12 = vld [vmem:[%s3830_s12 + $0x110] sm:$0xff]  ;;  %v842_v14 = vld [vmem:[%s3830_s12 + $0x118] sm:$0xff] }
  0x80   : > { %3068 = vmatmul.mubr.msk.f32.gmra.mxu0 %vm943_vm0, %v812_v18  ;;  %3164 = vmatmul.mubr.msk.f32.gmra.mxu1 %vm943_vm0, %v876_v19  ;;  %v905_v13 = vld [vmem:[%s3830_s12 + $0x310] sm:$0xff]  ;;  %v906_v15 = vld [vmem:[%s3830_s12 + $0x318] sm:$0xff]  ;;  %v843_v16 = vld [vmem:[%s3830_s12 + $0x120] sm:$0xff] }
  0x81   : > { %3070 = vmatprep.mubr.msk.f32.mxu0 %vm943_vm0, %v813_v20  ;;  %3166 = vmatprep.mubr.msk.f32.mxu1 %vm943_vm0, %v877_v21  ;;  %v907_v17 = vld [vmem:[%s3830_s12 + $0x320] sm:$0xff]  ;;  %v844_v18 = vld [vmem:[%s3830_s12 + $0x128] sm:$0xff]  ;;  %v845_v20 = vld [vmem:[%s3830_s12 + $0x130] sm:$0xff] }
  0x82   : > { %v908_v19 = vld [vmem:[%s3830_s12 + $0x328] sm:$0xff]  ;;  %v909_v21 = vld [vmem:[%s3830_s12 + $0x330] sm:$0xff] }
  0x84   : > { %3071 = vmatmul.mubr.msk.f32.gmra.mxu0 %vm943_vm0, %v814_v22  ;;  %3167 = vmatmul.mubr.msk.f32.gmra.mxu1 %vm943_vm0, %v878_v23  ;;  %v846_v22 = vld [vmem:[%s3830_s12 + $0x138] sm:$0xff] }
  0x85   : > { %3073 = vmatprep.mubr.msk.f32.mxu0 %vm943_vm0, %v815_v24  ;;  %3169 = vmatprep.mubr.msk.f32.mxu1 %vm943_vm0, %v879_v25  ;;  %v910_v23 = vld [vmem:[%s3830_s12 + $0x338] sm:$0xff]  ;;  %v847_v24 = vld [vmem:[%s3830_s12 + $0x140] sm:$0xff] }
  0x86   : > { %v911_v25 = vld [vmem:[%s3830_s12 + $0x340] sm:$0xff] }
  0x88   : > { %3074 = vmatmul.mubr.msk.f32.gmra.mxu0 %vm943_vm0, %v816_v26  ;;  %3170 = vmatmul.mubr.msk.f32.gmra.mxu1 %vm943_vm0, %v880_v27  ;;  %v848_v26 = vld [vmem:[%s3830_s12 + $0x148] sm:$0xff] }
  0x89   : > { %3076 = vmatprep.mubr.msk.f32.mxu0 %vm943_vm0, %v817_v28  ;;  %3172 = vmatprep.mubr.msk.f32.mxu1 %vm943_vm0, %v881_v29  ;;  %v912_v27 = vld [vmem:[%s3830_s12 + $0x348] sm:$0xff]  ;;  %v849_v28 = vld [vmem:[%s3830_s12 + $0x150] sm:$0xff] }
  0x8a   : > { %v913_v29 = vld [vmem:[%s3830_s12 + $0x350] sm:$0xff] }
  0x8c   : > { %3077 = vmatmul.mubr.msk.f32.gmra.mxu0 %vm943_vm0, %v818_v30  ;;  %3173 = vmatmul.mubr.msk.f32.gmra.mxu1 %vm943_vm0, %v882_v31  ;;  %v850_v30 = vld [vmem:[%s3830_s12 + $0x158] sm:$0xff] }
  0x8d   : > { %3079 = vmatprep.mubr.msk.f32.mxu0 %vm943_vm0, %v819_v32  ;;  %3175 = vmatprep.mubr.msk.f32.mxu1 %vm943_vm0, %v883_v33  ;;  %v914_v31 = vld [vmem:[%s3830_s12 + $0x358] sm:$0xff]  ;;  %v851_v32 = vld [vmem:[%s3830_s12 + $0x160] sm:$0xff] }
  0x8e   : > { %v915_v33 = vld [vmem:[%s3830_s12 + $0x360] sm:$0xff] }
  0x90   : > { %3080 = vmatmul.mubr.msk.f32.gmra.mxu0 %vm943_vm0, %v820_v34  ;;  %3176 = vmatmul.mubr.msk.f32.gmra.mxu1 %vm943_vm0, %v884_v35  ;;  %v852_v34 = vld [vmem:[%s3830_s12 + $0x168] sm:$0xff] }
  0x91   : > { %3082 = vmatprep.mubr.msk.f32.mxu0 %vm943_vm0, %v821_v36  ;;  %3178 = vmatprep.mubr.msk.f32.mxu1 %vm943_vm0, %v885_v37  ;;  %v916_v35 = vld [vmem:[%s3830_s12 + $0x368] sm:$0xff]  ;;  %v853_v36 = vld [vmem:[%s3830_s12 + $0x170] sm:$0xff] }
  0x92   : > { %v917_v37 = vld [vmem:[%s3830_s12 + $0x370] sm:$0xff] }
  0x94   : > { %3083 = vmatmul.mubr.msk.f32.gmra.mxu0 %vm943_vm0, %v822_v38  ;;  %3179 = vmatmul.mubr.msk.f32.gmra.mxu1 %vm943_vm0, %v886_v39  ;;  %v854_v38 = vld [vmem:[%s3830_s12 + $0x178] sm:$0xff] }
  0x95   : > { %3085 = vmatprep.mubr.msk.f32.mxu0 %vm943_vm0, %v823_v40  ;;  %3181 = vmatprep.mubr.msk.f32.mxu1 %vm943_vm0, %v887_v41  ;;  %v918_v39 = vld [vmem:[%s3830_s12 + $0x378] sm:$0xff]  ;;  %v855_v40 = vld [vmem:[%s3830_s12 + $0x180] sm:$0xff] }
  0x96   : > { %v919_v41 = vld [vmem:[%s3830_s12 + $0x380] sm:$0xff] }
  0x98   : > { %3086 = vmatmul.mubr.msk.f32.gmra.mxu0 %vm943_vm0, %v824_v42  ;;  %3182 = vmatmul.mubr.msk.f32.gmra.mxu1 %vm943_vm0, %v888_v43  ;;  %v856_v42 = vld [vmem:[%s3830_s12 + $0x188] sm:$0xff] }
  0x99   : > { %3088 = vmatprep.mubr.msk.f32.mxu0 %vm943_vm0, %v825_v44  ;;  %3184 = vmatprep.mubr.msk.f32.mxu1 %vm943_vm0, %v889_v45  ;;  %v920_v43 = vld [vmem:[%s3830_s12 + $0x388] sm:$0xff]  ;;  %v857_v44 = vld [vmem:[%s3830_s12 + $0x190] sm:$0xff] }
  0x9a   : > { %v921_v45 = vld [vmem:[%s3830_s12 + $0x390] sm:$0xff] }
  0x9c   : > { %3089 = vmatmul.mubr.msk.f32.gmra.mxu0 %vm943_vm0, %v826_v46  ;;  %3185 = vmatmul.mubr.msk.f32.gmra.mxu1 %vm943_vm0, %v890_v47  ;;  %v858_v46 = vld [vmem:[%s3830_s12 + $0x198] sm:$0xff] }
  0x9d   : > { %3091 = vmatprep.mubr.msk.f32.mxu0 %vm943_vm0, %v827_v48  ;;  %3187 = vmatprep.mubr.msk.f32.mxu1 %vm943_vm0, %v891_v49  ;;  %v922_v47 = vld [vmem:[%s3830_s12 + $0x398] sm:$0xff]  ;;  %v859_v48 = vld [vmem:[%s3830_s12 + $0x1a0] sm:$0xff] }
  0x9e   : > { %v923_v49 = vld [vmem:[%s3830_s12 + $0x3a0] sm:$0xff] }
  0xa0   : > { %3092 = vmatmul.mubr.msk.f32.gmra.mxu0 %vm943_vm0, %v828_v50  ;;  %3188 = vmatmul.mubr.msk.f32.gmra.mxu1 %vm943_vm0, %v892_v51  ;;  %v860_v50 = vld [vmem:[%s3830_s12 + $0x1a8] sm:$0xff] }
  0xa1   : > { %3094 = vmatprep.mubr.msk.f32.mxu0 %vm943_vm0, %v829_v52  ;;  %3190 = vmatprep.mubr.msk.f32.mxu1 %vm943_vm0, %v893_v53  ;;  %v924_v51 = vld [vmem:[%s3830_s12 + $0x3a8] sm:$0xff]  ;;  %v861_v52 = vld [vmem:[%s3830_s12 + $0x1b0] sm:$0xff] }
  0xa2   : > { %v925_v53 = vld [vmem:[%s3830_s12 + $0x3b0] sm:$0xff] }
  0xa4   : > { %3095 = vmatmul.mubr.msk.f32.gmra.mxu0 %vm943_vm0, %v830_v54  ;;  %3191 = vmatmul.mubr.msk.f32.gmra.mxu1 %vm943_vm0, %v894_v55  ;;  %v862_v54 = vld [vmem:[%s3830_s12 + $0x1b8] sm:$0xff] }
  0xa5   : > { %3097 = vmatprep.mubr.msk.f32.mxu0 %vm943_vm0, %v831_v56  ;;  %3193 = vmatprep.mubr.msk.f32.mxu1 %vm943_vm0, %v895_v57  ;;  %v926_v55 = vld [vmem:[%s3830_s12 + $0x3b8] sm:$0xff]  ;;  %v863_v56 = vld [vmem:[%s3830_s12 + $0x1c0] sm:$0xff] }
  0xa6   : > { %v927_v57 = vld [vmem:[%s3830_s12 + $0x3c0] sm:$0xff] }
  0xa8   : > { %3098 = vmatmul.mubr.msk.f32.gmra.mxu0 %vm943_vm0, %v832_v58  ;;  %3194 = vmatmul.mubr.msk.f32.gmra.mxu1 %vm943_vm0, %v896_v59  ;;  %v864_v58 = vld [vmem:[%s3830_s12 + $0x1c8] sm:$0xff] }
  0xa9   : > { %3100 = vmatprep.mubr.msk.f32.mxu0 %vm943_vm0, %v833_v60  ;;  %3196 = vmatprep.mubr.msk.f32.mxu1 %vm943_vm0, %v897_v61  ;;  %v928_v59 = vld [vmem:[%s3830_s12 + $0x3c8] sm:$0xff]  ;;  %v865_v60 = vld [vmem:[%s3830_s12 + $0x1d0] sm:$0xff] }
  0xaa   : > { %v929_v61 = vld [vmem:[%s3830_s12 + $0x3d0] sm:$0xff] }
  0xac   : > { %3101 = vmatmul.mubr.msk.f32.gmra.mxu0 %vm943_vm0, %v834_v62  ;;  %3197 = vmatmul.mubr.msk.f32.gmra.mxu1 %vm943_vm0, %v898_v63  ;;  %v866_v62 = vld [vmem:[%s3830_s12 + $0x1d8] sm:$0xff] }
  0xad   : > { %3103 = vmatprep.mubr.msk.f32.mxu0 %vm943_vm0, %v835_v0  ;;  %3199 = vmatprep.mubr.msk.f32.mxu1 %vm943_vm0, %v899_v1  ;;  %v930_v63 = vld [vmem:[%s3830_s12 + $0x3d8] sm:$0xff]  ;;  %v867_v0 = vld [vmem:[%s3830_s12 + $0x1e0] sm:$0xff] }
  0xae   : > { %v931_v1 = vld [vmem:[%s3830_s12 + $0x3e0] sm:$0xff] }
  0xb0   : > { %3104 = vmatmul.mubr.msk.f32.gmra.mxu0 %vm943_vm0, %v836_v2  ;;  %3200 = vmatmul.mubr.msk.f32.gmra.mxu1 %vm943_vm0, %v900_v3  ;;  %v868_v2 = vld [vmem:[%s3830_s12 + $0x1e8] sm:$0xff] }
  0xb1   : > { %3106 = vmatprep.mubr.msk.f32.mxu0 %vm943_vm0, %v837_v4  ;;  %3202 = vmatprep.mubr.msk.f32.mxu1 %vm943_vm0, %v901_v5  ;;  %v932_v3 = vld [vmem:[%s3830_s12 + $0x3e8] sm:$0xff]  ;;  %v869_v4 = vld [vmem:[%s3830_s12 + $0x1f0] sm:$0xff] }
  0xb2   : > { %v933_v5 = vld [vmem:[%s3830_s12 + $0x3f0] sm:$0xff] }
  0xb4   : > { %3107 = vmatmul.mubr.msk.f32.gmra.mxu0 %vm943_vm0, %v838_v6  ;;  %3203 = vmatmul.mubr.msk.f32.gmra.mxu1 %vm943_vm0, %v902_v7  ;;  %v870_v6 = vld [vmem:[%s3830_s12 + $0x1f8] sm:$0xff] }
  0xb5   : > { %3109 = vmatprep.mubr.msk.f32.mxu0 %vm943_vm0, %v839_v8  ;;  %3205 = vmatprep.mubr.msk.f32.mxu1 %vm943_vm0, %v903_v9  ;;  %v934_v7 = vld [vmem:[%s3830_s12 + $0x3f8] sm:$0xff]  ;;  %v3423_v8 = vmov 1966171168   ;;  %s4144_s12 = scalar_lea.vmem [#allocation3], %s3821_s5  ;;  %s2608_s5 = scalar_lea.sflag [#allocation4], %s756_s10 }
  0xb6   : > { %v2039_v9 = vunpack.c.l.s4 %v3423_v8 }
  0xb8   : > { %3110 = vmatmul.mubr.msk.f32.gmra.mxu0 %vm943_vm0, %v840_v10  ;;  %3206 = vmatmul.mubr.msk.f32.gmra.mxu1 %vm943_vm0, %v904_v11  ;;  %v2041_v10 = vlaneseq  ;;  %v2040_v11 = vunpack.c.0.s8 %v2039_v9 }
  0xb9   : > { %3112 = vmatprep.mubr.msk.f32.mxu0 %vm943_vm0, %v841_v12  ;;  %3208 = vmatprep.mubr.msk.f32.mxu1 %vm943_vm0, %v905_v13 }
  0xba   : > { %v2042_v12 = vshrl.u32 %v2041_v10, 7 }
  0xbc   : > { %3113 = vmatmul.mubr.msk.f32.gmra.mxu0 %vm943_vm0, %v842_v14  ;;  %3209 = vmatmul.mubr.msk.f32.gmra.mxu1 %vm943_vm0, %v906_v15  ;;  %v4095_v13 = vsub.s32 %v2040_v11, %v2042_v12  ;;  %v4098_v14 = vld [vmem:[%s797_s27] sm:$0xff]  ;;  %v4100_v15 = vld [vmem:[%s797_s27 + $0x8] sm:$0xff] }
  0xbd   : > { %3115 = vmatprep.mubr.msk.f32.mxu0 %vm943_vm0, %v843_v16  ;;  %3211 = vmatprep.mubr.msk.f32.mxu1 %vm943_vm0, %v907_v17 }
  0xbe   : > { %v2044_v16 = vrot.slane %v4098_v14, %v4095_v13  ;;  %v2093_v17 = vrot.slane %v4100_v15, %v4095_v13 }
  0xc0   : > { %3116 = vmatmul.mubr.msk.f32.gmra.mxu0 %vm943_vm0, %v844_v18  ;;  %3212 = vmatmul.mubr.msk.f32.gmra.mxu1 %vm943_vm0, %v908_v19  ;;  %v4108_v18 = vrot.slane %v2044_v16, %v4095_v13  ;;  %v4110_v19 = vsub.s32 0, %v2042_v12 }
  0xc1   : > { %3118 = vmatprep.mubr.msk.f32.mxu0 %vm943_vm0, %v845_v20  ;;  %3214 = vmatprep.mubr.msk.f32.mxu1 %vm943_vm0, %v909_v21  ;;  %v4113_v20 = vrot.slane %v2093_v17, %v4095_v13 }
  0xc2   : > { %v4122_v21 = vrot.slane %v4108_v18, %v4110_v19 }
  0xc4   : > { %3119 = vmatmul.mubr.msk.f32.gmra.mxu0 %vm943_vm0, %v846_v22  ;;  %3215 = vmatmul.mubr.msk.f32.gmra.mxu1 %vm943_vm0, %v910_v23  ;;  %v4126_v22 = vrot.slane %v4113_v20, %v4110_v19 }
  0xc5   : > { %3121 = vmatprep.mubr.msk.f32.mxu0 %vm943_vm0, %v847_v24  ;;  %3217 = vmatprep.mubr.msk.f32.mxu1 %vm943_vm0, %v911_v25  ;;  %v4129_v24 = vld [vmem:[%s4118_s11 + $0x8] sm:$0xff] }
  0xc8   : > { %3122 = vmatmul.mubr.msk.f32.gmra.mxu0 %vm943_vm0, %v848_v26  ;;  %3218 = vmatmul.mubr.msk.f32.gmra.mxu1 %vm943_vm0, %v912_v27 }
  0xc9   : > { %3124 = vmatprep.mubr.msk.f32.mxu0 %vm943_vm0, %v849_v28  ;;  %3220 = vmatprep.mubr.msk.f32.mxu1 %vm943_vm0, %v913_v29  ;;  %v4134_v29 = vld [vmem:[%s4118_s11] sm:$0xff] }
  0xcc   : > { %3125 = vmatmul.mubr.msk.f32.gmra.mxu0 %vm943_vm0, %v850_v30  ;;  %3221 = vmatmul.mubr.msk.f32.gmra.mxu1 %vm943_vm0, %v914_v31 }
  0xcd   : > { %3127 = vmatprep.mubr.msk.f32.mxu0 %vm943_vm0, %v851_v32  ;;  %3223 = vmatprep.mubr.msk.f32.mxu1 %vm943_vm0, %v915_v33 }
  0xd0   : > { %3128 = vmatmul.mubr.msk.f32.gmra.mxu0 %vm943_vm0, %v852_v34  ;;  %3224 = vmatmul.mubr.msk.f32.gmra.mxu1 %vm943_vm0, %v916_v35 }
  0xd1   : > { %3130 = vmatprep.mubr.msk.f32.mxu0 %vm943_vm0, %v853_v36  ;;  %3226 = vmatprep.mubr.msk.f32.mxu1 %vm943_vm0, %v917_v37  ;;  %v4141_v36 = vld [vmem:[%s4118_s11 + $0x18] sm:$0xff] }
  0xd4   : > { %3131 = vmatmul.mubr.msk.f32.gmra.mxu0 %vm943_vm0, %v854_v38  ;;  %3227 = vmatmul.mubr.msk.f32.gmra.mxu1 %vm943_vm0, %v918_v39  ;;  %v2052_v38 = vcombine.high %v2044_v16, %v2044_v16  ;;  %v2101_v39 = vcombine.high %v2093_v17, %v2093_v17  ;;  %v4203_v16 = vld [vmem:[%s4118_s11 + $0x30] sm:$0xff] }
  0xd5   : > { %3133 = vmatprep.mubr.msk.f32.mxu0 %vm943_vm0, %v855_v40  ;;  %3229 = vmatprep.mubr.msk.f32.mxu1 %vm943_vm0, %v919_v41 }
  0xd8   : > { %3134 = vmatmul.mubr.msk.f32.gmra.mxu0 %vm943_vm0, %v856_v42  ;;  %3230 = vmatmul.mubr.msk.f32.gmra.mxu1 %vm943_vm0, %v920_v43 }
  0xd9   : > { %3136 = vmatprep.mubr.msk.f32.mxu0 %vm943_vm0, %v857_v44  ;;  %3232 = vmatprep.mubr.msk.f32.mxu1 %vm943_vm0, %v921_v45  ;;  %v4153_v45 = vld [vmem:[%s4118_s11 + $0x10] sm:$0xff] }
  0xdc   : > { %3137 = vmatmul.mubr.msk.f32.gmra.mxu0 %vm943_vm0, %v858_v46  ;;  %3233 = vmatmul.mubr.msk.f32.gmra.mxu1 %vm943_vm0, %v922_v47 }
  0xdd   : > { %3139 = vmatprep.mubr.msk.f32.mxu0 %vm943_vm0, %v859_v48  ;;  %3235 = vmatprep.mubr.msk.f32.mxu1 %vm943_vm0, %v923_v49 }
  0xe0   : > { %3140 = vmatmul.mubr.msk.f32.gmra.mxu0 %vm943_vm0, %v860_v50  ;;  %3236 = vmatmul.mubr.msk.f32.gmra.mxu1 %vm943_vm0, %v924_v51 }
  0xe1   : > { %3142 = vmatprep.mubr.msk.f32.mxu0 %vm943_vm0, %v861_v52  ;;  %3238 = vmatprep.mubr.msk.f32.mxu1 %vm943_vm0, %v925_v53  ;;  %v4162_v52 = vld [vmem:[%s4118_s11 + $0x28] sm:$0xff] }
  0xe4   : > { %3143 = vmatmul.mubr.msk.f32.gmra.mxu0 %vm943_vm0, %v862_v54  ;;  %3239 = vmatmul.mubr.msk.f32.gmra.mxu1 %vm943_vm0, %v926_v55  ;;  %v4165_v54 = vrot.slane %v2052_v38, %v4095_v13  ;;  %v4168_v55 = vrot.slane %v2101_v39, %v4095_v13 }
  0xe5   : > { %3145 = vmatprep.mubr.msk.f32.mxu0 %vm943_vm0, %v863_v56  ;;  %3241 = vmatprep.mubr.msk.f32.mxu1 %vm943_vm0, %v927_v57 }
  0xe8   : > { %3146 = vmatmul.mubr.msk.f32.gmra.mxu0 %vm943_vm0, %v864_v58  ;;  %3242 = vmatmul.mubr.msk.f32.gmra.mxu1 %vm943_vm0, %v928_v59 }
  0xe9   : > { %3148 = vmatprep.mubr.msk.f32.mxu0 %vm943_vm0, %v865_v60  ;;  %3244 = vmatprep.mubr.msk.f32.mxu1 %vm943_vm0, %v929_v61  ;;  %v4177_v61 = vld [vmem:[%s4118_s11 + $0x20] sm:$0xff] }
  0xec   : > { %3149 = vmatmul.mubr.msk.f32.gmra.mxu0 %vm943_vm0, %v866_v62  ;;  %3245 = vmatmul.mubr.msk.f32.gmra.mxu1 %vm943_vm0, %v930_v63 }
  0xed   : > { %3151 = vmatprep.mubr.msk.f32.mxu0 %vm943_vm0, %v867_v0  ;;  %3247 = vmatprep.mubr.msk.f32.mxu1 %vm943_vm0, %v931_v1 }
  0xf0   : > { %3152 = vmatmul.mubr.msk.f32.gmra.mxu0 %vm943_vm0, %v868_v2  ;;  %3248 = vmatmul.mubr.msk.f32.gmra.mxu1 %vm943_vm0, %v932_v3 }
  0xf1   : > { %3154 = vmatprep.mubr.msk.f32.mxu0 %vm943_vm0, %v869_v4  ;;  %3250 = vmatprep.mubr.msk.f32.mxu1 %vm943_vm0, %v933_v5  ;;  %v4186_v4 = vld [vmem:[%s4118_s11 + $0x38] sm:$0xff] }
  0xf4   : > { %3155 = vmatmul.mubr.msk.f32.gmra.mxu0 %vm943_vm0, %v870_v6  ;;  %3251 = vmatmul.mubr.msk.f32.gmra.mxu1 %vm943_vm0, %v934_v7  ;;  %v4190_v6 = vrot.slane %v4165_v54, %v4110_v19  ;;  %v4194_v7 = vrot.slane %v4168_v55, %v4110_v19 }
 0x138   : > { %v3063_v23 = vpop.f32.mrf.mxu0  ;;  %v3159_v25 = vpop.f32.mrf.mxu1 }
 0x139   : > { %v2216_v26 = vadd.f32 %v3063_v23, %v4122_v21  ;;  %v2280_v27 = vadd.f32 %v3159_v25, %v4126_v22 }
 0x13a   : > { %v1394_v28 = vpop.f32.mrf.mxu0  ;;  %v1714_v30 = vpop.f32.mrf.mxu1 }
 0x13b   : > { %v2352_v31 = vadd.f32 %v4129_v24, %v2216_v26  ;;  %v2416_v32 = vadd.f32 %v4129_v24, %v2280_v27  ;;  %v2215_v33 = vadd.f32 %v4122_v21, %v1394_v28  ;;  %v2279_v34 = vadd.f32 %v4126_v22, %v1714_v30 }
 0x13c   : > { %v3066_v35 = vpop.f32.mrf.mxu0  ;;  %v3162_v37 = vpop.f32.mrf.mxu1 }
 0x13d   : > { %2480 = vst [vmem:[%s4144_s12 + $0x8] sm:$0xff] %v2352_v31  ;;  %2544 = vst [vmem:[%s4144_s12 + $0x208] sm:$0xff] %v2416_v32  ;;  %v2351_v40 = vadd.f32 %v4134_v29, %v2215_v33  ;;  %v2415_v41 = vadd.f32 %v4134_v29, %v2279_v34  ;;  %v2218_v42 = vadd.f32 %v3066_v35, %v4122_v21 }
 0x13e   : > { %v2282_v43 = vadd.f32 %v3162_v37, %v4126_v22  ;;  %v1404_v44 = vpop.f32.mrf.mxu0  ;;  %v1724_v46 = vpop.f32.mrf.mxu1 }
 0x13f   : > { %2479 = vst [vmem:[%s4144_s12] sm:$0xff] %v2351_v40  ;;  %2543 = vst [vmem:[%s4144_s12 + $0x200] sm:$0xff] %v2415_v41  ;;  %v2354_v47 = vadd.f32 %v4141_v36, %v2218_v42  ;;  %v2217_v49 = vadd.f32 %v4122_v21, %v1404_v44  ;;  %v2281_v50 = vadd.f32 %v4126_v22, %v1724_v46 }
 0x140   : > { %v2418_v48 = vadd.f32 %v4141_v36, %v2282_v43  ;;  %v3069_v51 = vpop.f32.mrf.mxu0  ;;  %v3165_v53 = vpop.f32.mrf.mxu1 }
 0x141   : > { %2482 = vst [vmem:[%s4144_s12 + $0x18] sm:$0xff] %v2354_v47  ;;  %v2353_v56 = vadd.f32 %v4153_v45, %v2217_v49  ;;  %v2417_v57 = vadd.f32 %v4153_v45, %v2281_v50  ;;  %v2220_v58 = vadd.f32 %v3069_v51, %v4122_v21  ;;  %v2284_v59 = vadd.f32 %v3165_v53, %v4126_v22 }
 0x142   : > { %2546 = vst [vmem:[%s4144_s12 + $0x218] sm:$0xff] %v2418_v48  ;;  %v1414_v60 = vpop.f32.mrf.mxu0  ;;  %v1734_v62 = vpop.f32.mrf.mxu1 }
 0x143   : > { %2481 = vst [vmem:[%s4144_s12 + $0x10] sm:$0xff] %v2353_v56  ;;  %2545 = vst [vmem:[%s4144_s12 + $0x210] sm:$0xff] %v2417_v57  ;;  %v2356_v63 = vadd.f32 %v4162_v52, %v2220_v58  ;;  %v2420_v0 = vadd.f32 %v4162_v52, %v2284_v59  ;;  %v2219_v1 = vadd.f32 %v4122_v21, %v1414_v60 }
 0x144   : > { %v2283_v2 = vadd.f32 %v4126_v22, %v1734_v62  ;;  %v3072_v3 = vpop.f32.mrf.mxu0  ;;  %v3168_v5 = vpop.f32.mrf.mxu1  ;;  %v2082_v58 = vcombine.high %v4108_v18, %v4108_v18  ;;  %v2131_v59 = vcombine.high %v4113_v20, %v4113_v20 }
 0x145   : > { %2484 = vst [vmem:[%s4144_s12 + $0x28] sm:$0xff] %v2356_v63  ;;  %2548 = vst [vmem:[%s4144_s12 + $0x228] sm:$0xff] %v2420_v0  ;;  %v2355_v8 = vadd.f32 %v4177_v61, %v2219_v1  ;;  %v2222_v10 = vadd.f32 %v3072_v3, %v4122_v21  ;;  %v2286_v11 = vadd.f32 %v3168_v5, %v4126_v22 }
 0x146   : > { %v2419_v9 = vadd.f32 %v4177_v61, %v2283_v2  ;;  %v1424_v12 = vpop.f32.mrf.mxu0  ;;  %v1744_v17 = vpop.f32.mrf.mxu1 }
 0x147   : > { %2483 = vst [vmem:[%s4144_s12 + $0x20] sm:$0xff] %v2355_v8  ;;  %v2358_v23 = vadd.f32 %v4186_v4, %v2222_v10  ;;  %v2422_v25 = vadd.f32 %v4186_v4, %v2286_v11  ;;  %v2221_v26 = vadd.f32 %v4122_v21, %v1424_v12  ;;  %v2285_v27 = vadd.f32 %v4126_v22, %v1744_v17 }
 0x148   : > { %2547 = vst [vmem:[%s4144_s12 + $0x220] sm:$0xff] %v2419_v9  ;;  %v3075_v28 = vpop.f32.mrf.mxu0  ;;  %v3171_v30 = vpop.f32.mrf.mxu1  ;;  %v4252_v10 = vrot.slane %v2082_v58, %v4110_v19  ;;  %v4255_v11 = vrot.slane %v2131_v59, %v4110_v19 }
 0x149   : > { %2486 = vst [vmem:[%s4144_s12 + $0x38] sm:$0xff] %v2358_v23  ;;  %2550 = vst [vmem:[%s4144_s12 + $0x238] sm:$0xff] %v2422_v25  ;;  %v2357_v31 = vadd.f32 %v4203_v16, %v2221_v26  ;;  %v2421_v32 = vadd.f32 %v4203_v16, %v2285_v27  ;;  %v2224_v33 = vadd.f32 %v3075_v28, %v4190_v6 }
 0x14a   : > { %v2288_v34 = vadd.f32 %v3171_v30, %v4194_v7  ;;  %v1434_v35 = vpop.f32.mrf.mxu0  ;;  %v1754_v37 = vpop.f32.mrf.mxu1 }
 0x14b   : > { %2485 = vst [vmem:[%s4144_s12 + $0x30] sm:$0xff] %v2357_v31  ;;  %2549 = vst [vmem:[%s4144_s12 + $0x230] sm:$0xff] %v2421_v32  ;;  %v2360_v21 = vadd.f32 %v4129_v24, %v2224_v33  ;;  %v2223_v38 = vadd.f32 %v4190_v6, %v1434_v35  ;;  %v2287_v39 = vadd.f32 %v4194_v7, %v1754_v37 }
 0x14c   : > { %v2424_v22 = vadd.f32 %v4129_v24, %v2288_v34  ;;  %v3078_v40 = vpop.f32.mrf.mxu0  ;;  %v3174_v41 = vpop.f32.mrf.mxu1 }
 0x14d   : > { %2488 = vst [vmem:[%s4144_s12 + $0x48] sm:$0xff] %v2360_v21  ;;  %v2359_v42 = vadd.f32 %v4134_v29, %v2223_v38  ;;  %v2423_v43 = vadd.f32 %v4134_v29, %v2287_v39  ;;  %v2226_v44 = vadd.f32 %v3078_v40, %v4190_v6  ;;  %v2290_v46 = vadd.f32 %v3174_v41, %v4194_v7 }
 0x14e   : > { %2552 = vst [vmem:[%s4144_s12 + $0x248] sm:$0xff] %v2424_v22  ;;  %v1444_v47 = vpop.f32.mrf.mxu0  ;;  %v1764_v48 = vpop.f32.mrf.mxu1 }
 0x14f   : > { %2487 = vst [vmem:[%s4144_s12 + $0x40] sm:$0xff] %v2359_v42  ;;  %2551 = vst [vmem:[%s4144_s12 + $0x240] sm:$0xff] %v2423_v43  ;;  %v2362_v49 = vadd.f32 %v4141_v36, %v2226_v44  ;;  %v2426_v50 = vadd.f32 %v4141_v36, %v2290_v46  ;;  %v2225_v51 = vadd.f32 %v4190_v6, %v1444_v47 }
 0x150   : > { %v2289_v53 = vadd.f32 %v4194_v7, %v1764_v48  ;;  %v3081_v56 = vpop.f32.mrf.mxu0  ;;  %v3177_v57 = vpop.f32.mrf.mxu1 }
 0x151   : > { %2490 = vst [vmem:[%s4144_s12 + $0x58] sm:$0xff] %v2362_v49  ;;  %2554 = vst [vmem:[%s4144_s12 + $0x258] sm:$0xff] %v2426_v50  ;;  %v2361_v60 = vadd.f32 %v4153_v45, %v2225_v51  ;;  %v2228_v63 = vadd.f32 %v3081_v56, %v4190_v6  ;;  %v2292_v0 = vadd.f32 %v3177_v57, %v4194_v7 }
 0x152   : > { %v2425_v62 = vadd.f32 %v4153_v45, %v2289_v53  ;;  %v1454_v1 = vpop.f32.mrf.mxu0  ;;  %v1774_v2 = vpop.f32.mrf.mxu1 }
 0x153   : > { %2489 = vst [vmem:[%s4144_s12 + $0x50] sm:$0xff] %v2361_v60  ;;  %v2364_v18 = vadd.f32 %v4162_v52, %v2228_v63  ;;  %v2428_v20 = vadd.f32 %v4162_v52, %v2292_v0  ;;  %v2227_v3 = vadd.f32 %v4190_v6, %v1454_v1  ;;  %v2291_v5 = vadd.f32 %v4194_v7, %v1774_v2 }
 0x154   : > { %2553 = vst [vmem:[%s4144_s12 + $0x250] sm:$0xff] %v2425_v62  ;;  %v3084_v8 = vpop.f32.mrf.mxu0  ;;  %v3180_v9 = vpop.f32.mrf.mxu1  ;;  %v2084_v60 = vcombine.high %v4165_v54, %v4165_v54  ;;  %v2133_v62 = vcombine.high %v4168_v55, %v4168_v55 }
 0x155   : > { %2492 = vst [vmem:[%s4144_s12 + $0x68] sm:$0xff] %v2364_v18  ;;  %2556 = vst [vmem:[%s4144_s12 + $0x268] sm:$0xff] %v2428_v20  ;;  %v2363_v12 = vadd.f32 %v4177_v61, %v2227_v3  ;;  %v2427_v17 = vadd.f32 %v4177_v61, %v2291_v5  ;;  %v2230_v23 = vadd.f32 %v3084_v8, %v4190_v6 }
 0x156   : > { %v2294_v25 = vadd.f32 %v3180_v9, %v4194_v7  ;;  %v1464_v26 = vpop.f32.mrf.mxu0  ;;  %v1784_v27 = vpop.f32.mrf.mxu1 }
 0x157   : > { %2491 = vst [vmem:[%s4144_s12 + $0x60] sm:$0xff] %v2363_v12  ;;  %2555 = vst [vmem:[%s4144_s12 + $0x260] sm:$0xff] %v2427_v17  ;;  %v2366_v28 = vadd.f32 %v4186_v4, %v2230_v23  ;;  %v2229_v31 = vadd.f32 %v4190_v6, %v1464_v26  ;;  %v2293_v32 = vadd.f32 %v4194_v7, %v1784_v27 }
 0x158   : > { %v2430_v30 = vadd.f32 %v4186_v4, %v2294_v25  ;;  %v3087_v33 = vpop.f32.mrf.mxu0  ;;  %v3183_v34 = vpop.f32.mrf.mxu1  ;;  %v4310_v12 = vrot.slane %v2084_v60, %v4110_v19  ;;  %v4313_v17 = vrot.slane %v2133_v62, %v4110_v19 }
 0x159   : > { %2494 = vst [vmem:[%s4144_s12 + $0x78] sm:$0xff] %v2366_v28  ;;  %v2365_v35 = vadd.f32 %v4203_v16, %v2229_v31  ;;  %v2429_v37 = vadd.f32 %v4203_v16, %v2293_v32  ;;  %v2232_v21 = vadd.f32 %v3087_v33, %v4252_v10  ;;  %v2296_v22 = vadd.f32 %v3183_v34, %v4255_v11 }
 0x15a   : > { %2558 = vst [vmem:[%s4144_s12 + $0x278] sm:$0xff] %v2430_v30  ;;  %v1474_v38 = vpop.f32.mrf.mxu0  ;;  %v1794_v39 = vpop.f32.mrf.mxu1 }
 0x15b   : > { %2493 = vst [vmem:[%s4144_s12 + $0x70] sm:$0xff] %v2365_v35  ;;  %2557 = vst [vmem:[%s4144_s12 + $0x270] sm:$0xff] %v2429_v37  ;;  %v2368_v6 = vadd.f32 %v4129_v24, %v2232_v21  ;;  %v2432_v7 = vadd.f32 %v4129_v24, %v2296_v22  ;;  %v2231_v40 = vadd.f32 %v4252_v10, %v1474_v38 }
 0x15c   : > { %v2295_v41 = vadd.f32 %v4255_v11, %v1794_v39  ;;  %v3090_v42 = vpop.f32.mrf.mxu0  ;;  %v3186_v43 = vpop.f32.mrf.mxu1  ;;  %v2037_v21 = vcombine.high %v4098_v14, %v4098_v14  ;;  %v2086_v22 = vcombine.high %v4100_v15, %v4100_v15 }
 0x15d   : > { %2496 = vst [vmem:[%s4144_s12 + $0x88] sm:$0xff] %v2368_v6  ;;  %2560 = vst [vmem:[%s4144_s12 + $0x288] sm:$0xff] %v2432_v7  ;;  %v2367_v44 = vadd.f32 %v4134_v29, %v2231_v40  ;;  %v2234_v47 = vadd.f32 %v3090_v42, %v4252_v10  ;;  %v2298_v48 = vadd.f32 %v3186_v43, %v4255_v11 }
 0x15e   : > { %v2431_v46 = vadd.f32 %v4134_v29, %v2295_v41  ;;  %v1484_v49 = vpop.f32.mrf.mxu0  ;;  %v1804_v50 = vpop.f32.mrf.mxu1 }
 0x15f   : > { %2495 = vst [vmem:[%s4144_s12 + $0x80] sm:$0xff] %v2367_v44  ;;  %v2370_v51 = vadd.f32 %v4141_v36, %v2234_v47  ;;  %v2434_v53 = vadd.f32 %v4141_v36, %v2298_v48  ;;  %v2233_v56 = vadd.f32 %v4252_v10, %v1484_v49  ;;  %v2297_v57 = vadd.f32 %v4255_v11, %v1804_v50 }
 0x160   : > { %2559 = vst [vmem:[%s4144_s12 + $0x280] sm:$0xff] %v2431_v46  ;;  %v3093_v58 = vpop.f32.mrf.mxu0  ;;  %v3189_v59 = vpop.f32.mrf.mxu1  ;;  %v4344_v44 = vrot.slane %v2037_v21, %v4095_v13  ;;  %v4347_v46 = vrot.slane %v2086_v22, %v4095_v13 }
 0x161   : > { %2498 = vst [vmem:[%s4144_s12 + $0x98] sm:$0xff] %v2370_v51  ;;  %2562 = vst [vmem:[%s4144_s12 + $0x298] sm:$0xff] %v2434_v53  ;;  %v2369_v63 = vadd.f32 %v4153_v45, %v2233_v56  ;;  %v2433_v0 = vadd.f32 %v4153_v45, %v2297_v57  ;;  %v2236_v1 = vadd.f32 %v3093_v58, %v4252_v10 }
 0x162   : > { %v2300_v2 = vadd.f32 %v3189_v59, %v4255_v11  ;;  %v1494_v18 = vpop.f32.mrf.mxu0  ;;  %v1814_v20 = vpop.f32.mrf.mxu1 }
 0x163   : > { %2497 = vst [vmem:[%s4144_s12 + $0x90] sm:$0xff] %v2369_v63  ;;  %2561 = vst [vmem:[%s4144_s12 + $0x290] sm:$0xff] %v2433_v0  ;;  %v2372_v54 = vadd.f32 %v4162_v52, %v2236_v1  ;;  %v2235_v3 = vadd.f32 %v4252_v10, %v1494_v18  ;;  %v2299_v5 = vadd.f32 %v4255_v11, %v1814_v20 }
 0x164   : > { %v2436_v55 = vadd.f32 %v4162_v52, %v2300_v2  ;;  %v3096_v8 = vpop.f32.mrf.mxu0  ;;  %v3192_v9 = vpop.f32.mrf.mxu1  ;;  %v4363_v63 = vrot.slane %v4344_v44, %v4095_v13  ;;  %v4367_v0 = vrot.slane %v4347_v46, %v4095_v13 }
 0x165   : > { %2500 = vst [vmem:[%s4144_s12 + $0xa8] sm:$0xff] %v2372_v54  ;;  %v2371_v23 = vadd.f32 %v4177_v61, %v2235_v3  ;;  %v2435_v25 = vadd.f32 %v4177_v61, %v2299_v5  ;;  %v2238_v26 = vadd.f32 %v3096_v8, %v4252_v10  ;;  %v2302_v27 = vadd.f32 %v3192_v9, %v4255_v11 }
 0x166   : > { %2564 = vst [vmem:[%s4144_s12 + $0x2a8] sm:$0xff] %v2436_v55  ;;  %v1504_v28 = vpop.f32.mrf.mxu0  ;;  %v1824_v30 = vpop.f32.mrf.mxu1 }
 0x167   : > { %2499 = vst [vmem:[%s4144_s12 + $0xa0] sm:$0xff] %v2371_v23  ;;  %2563 = vst [vmem:[%s4144_s12 + $0x2a0] sm:$0xff] %v2435_v25  ;;  %v2374_v31 = vadd.f32 %v4186_v4, %v2238_v26  ;;  %v2438_v32 = vadd.f32 %v4186_v4, %v2302_v27  ;;  %v2237_v33 = vadd.f32 %v4252_v10, %v1504_v28 }
 0x168   : > { %v2301_v34 = vadd.f32 %v4255_v11, %v1824_v30  ;;  %v3099_v35 = vpop.f32.mrf.mxu0  ;;  %v3195_v37 = vpop.f32.mrf.mxu1  ;;  %v4383_v26 = vrot.slane %v4363_v63, %v4110_v19  ;;  %v4387_v27 = vrot.slane %v4367_v0, %v4110_v19 }
 0x169   : > { %2502 = vst [vmem:[%s4144_s12 + $0xb8] sm:$0xff] %v2374_v31  ;;  %2566 = vst [vmem:[%s4144_s12 + $0x2b8] sm:$0xff] %v2438_v32  ;;  %v2373_v38 = vadd.f32 %v4203_v16, %v2237_v33  ;;  %v2240_v10 = vadd.f32 %v3099_v35, %v4310_v12  ;;  %v2304_v11 = vadd.f32 %v3195_v37, %v4313_v17 }
 0x16a   : > { %v2437_v39 = vadd.f32 %v4203_v16, %v2301_v34  ;;  %v1514_v6 = vpop.f32.mrf.mxu0  ;;  %v1834_v7 = vpop.f32.mrf.mxu1 }
 0x16b   : > { %2501 = vst [vmem:[%s4144_s12 + $0xb0] sm:$0xff] %v2373_v38  ;;  %v2376_v14 = vadd.f32 %v4129_v24, %v2240_v10  ;;  %v2440_v15 = vadd.f32 %v4129_v24, %v2304_v11  ;;  %v2239_v40 = vadd.f32 %v4310_v12, %v1514_v6  ;;  %v2303_v41 = vadd.f32 %v4313_v17, %v1834_v7 }
 0x16c   : > { %2565 = vst [vmem:[%s4144_s12 + $0x2b0] sm:$0xff] %v2437_v39  ;;  %v3102_v42 = vpop.f32.mrf.mxu0  ;;  %v3198_v43 = vpop.f32.mrf.mxu1 }
 0x16d   : > { %2504 = vst [vmem:[%s4144_s12 + $0xc8] sm:$0xff] %v2376_v14  ;;  %2568 = vst [vmem:[%s4144_s12 + $0x2c8] sm:$0xff] %v2440_v15  ;;  %v2375_v47 = vadd.f32 %v4134_v29, %v2239_v40  ;;  %v2439_v48 = vadd.f32 %v4134_v29, %v2303_v41  ;;  %v2242_v49 = vadd.f32 %v3102_v42, %v4310_v12 }
 0x16e   : > { %v2306_v50 = vadd.f32 %v3198_v43, %v4313_v17  ;;  %v1524_v51 = vpop.f32.mrf.mxu0  ;;  %v1844_v53 = vpop.f32.mrf.mxu1 }
 0x16f   : > { %2503 = vst [vmem:[%s4144_s12 + $0xc0] sm:$0xff] %v2375_v47  ;;  %2567 = vst [vmem:[%s4144_s12 + $0x2c0] sm:$0xff] %v2439_v48  ;;  %v2378_v56 = vadd.f32 %v4141_v36, %v2242_v49  ;;  %v2241_v58 = vadd.f32 %v4310_v12, %v1524_v51  ;;  %v2305_v59 = vadd.f32 %v4313_v17, %v1844_v53 }
 0x170   : > { %v2442_v57 = vadd.f32 %v4141_v36, %v2306_v50  ;;  %v3105_v60 = vpop.f32.mrf.mxu0  ;;  %v3201_v62 = vpop.f32.mrf.mxu1  ;;  %v2053_v47 = vcombine.high %v4344_v44, %v4344_v44  ;;  %v2102_v48 = vcombine.high %v4347_v46, %v4347_v46 }
 0x171   : > { %2506 = vst [vmem:[%s4144_s12 + $0xd8] sm:$0xff] %v2378_v56  ;;  %v2377_v1 = vadd.f32 %v4153_v45, %v2241_v58  ;;  %v2441_v2 = vadd.f32 %v4153_v45, %v2305_v59  ;;  %v2244_v18 = vadd.f32 %v3105_v60, %v4310_v12  ;;  %v2308_v20 = vadd.f32 %v3201_v62, %v4313_v17 }
 0x172   : > { %2570 = vst [vmem:[%s4144_s12 + $0x2d8] sm:$0xff] %v2442_v57  ;;  %v1534_v54 = vpop.f32.mrf.mxu0  ;;  %v1854_v55 = vpop.f32.mrf.mxu1 }
 0x173   : > { %2505 = vst [vmem:[%s4144_s12 + $0xd0] sm:$0xff] %v2377_v1  ;;  %2569 = vst [vmem:[%s4144_s12 + $0x2d0] sm:$0xff] %v2441_v2  ;;  %v2380_v3 = vadd.f32 %v4162_v52, %v2244_v18  ;;  %v2444_v5 = vadd.f32 %v4162_v52, %v2308_v20  ;;  %v2243_v8 = vadd.f32 %v4310_v12, %v1534_v54 }
 0x174   : > { %v2307_v9 = vadd.f32 %v4313_v17, %v1854_v55  ;;  %v3108_v23 = vpop.f32.mrf.mxu0  ;;  %v3204_v25 = vpop.f32.mrf.mxu1  ;;  %v4430_v1 = vrot.slane %v2053_v47, %v4095_v13  ;;  %v4433_v2 = vrot.slane %v2102_v48, %v4095_v13 }
 0x175   : > { %2508 = vst [vmem:[%s4144_s12 + $0xe8] sm:$0xff] %v2380_v3  ;;  %2572 = vst [vmem:[%s4144_s12 + $0x2e8] sm:$0xff] %v2444_v5  ;;  %v2379_v28 = vadd.f32 %v4177_v61, %v2243_v8  ;;  %v2246_v31 = vadd.f32 %v3108_v23, %v4310_v12  ;;  %v2310_v32 = vadd.f32 %v3204_v25, %v4313_v17 }
 0x176   : > { %v2443_v30 = vadd.f32 %v4177_v61, %v2307_v9  ;;  %v1544_v33 = vpop.f32.mrf.mxu0  ;;  %v1864_v34 = vpop.f32.mrf.mxu1 }
 0x177   : > { %2507 = vst [vmem:[%s4144_s12 + $0xe0] sm:$0xff] %v2379_v28  ;;  %v2382_v35 = vadd.f32 %v4186_v4, %v2246_v31  ;;  %v2446_v37 = vadd.f32 %v4186_v4, %v2310_v32  ;;  %v2245_v21 = vadd.f32 %v4310_v12, %v1544_v33  ;;  %v2309_v22 = vadd.f32 %v4313_v17, %v1864_v34 }
 0x178   : > { %2571 = vst [vmem:[%s4144_s12 + $0x2e0] sm:$0xff] %v2443_v30  ;;  %v3111_v38 = vpop.f32.mrf.mxu0  ;;  %v3207_v39 = vpop.f32.mrf.mxu1  ;;  %v4449_v30 = vrot.slane %v4430_v1, %v4110_v19  ;;  %v4453_v31 = vrot.slane %v4433_v2, %v4110_v19 }
 0x179   : > { %2510 = vst [vmem:[%s4144_s12 + $0xf8] sm:$0xff] %v2382_v35  ;;  %2574 = vst [vmem:[%s4144_s12 + $0x2f8] sm:$0xff] %v2446_v37  ;;  %v2381_v10 = vadd.f32 %v4203_v16, %v2245_v21  ;;  %v2445_v11 = vadd.f32 %v4203_v16, %v2309_v22  ;;  %v2248_v6 = vadd.f32 %v3111_v38, %v4383_v26 }
 0x17a   : > { %v2312_v7 = vadd.f32 %v3207_v39, %v4387_v27  ;;  %v1554_v14 = vpop.f32.mrf.mxu0  ;;  %v1874_v15 = vpop.f32.mrf.mxu1 }
 0x17b   : > { %2509 = vst [vmem:[%s4144_s12 + $0xf0] sm:$0xff] %v2381_v10  ;;  %2573 = vst [vmem:[%s4144_s12 + $0x2f0] sm:$0xff] %v2445_v11  ;;  %v2384_v12 = vadd.f32 %v4129_v24, %v2248_v6  ;;  %v2247_v40 = vadd.f32 %v4383_v26, %v1554_v14  ;;  %v2311_v41 = vadd.f32 %v4387_v27, %v1874_v15 }
 0x17c   : > { %v2448_v17 = vadd.f32 %v4129_v24, %v2312_v7  ;;  %v3114_v42 = vpop.f32.mrf.mxu0  ;;  %v3210_v43 = vpop.f32.mrf.mxu1 }
 0x17d   : > { %2512 = vst [vmem:[%s4144_s12 + $0x108] sm:$0xff] %v2384_v12  ;;  %v2383_v49 = vadd.f32 %v4134_v29, %v2247_v40  ;;  %v2447_v50 = vadd.f32 %v4134_v29, %v2311_v41  ;;  %v2250_v51 = vadd.f32 %v3114_v42, %v4383_v26  ;;  %v2314_v53 = vadd.f32 %v3210_v43, %v4387_v27 }
 0x17e   : > { %2576 = vst [vmem:[%s4144_s12 + $0x308] sm:$0xff] %v2448_v17  ;;  %v1564_v56 = vpop.f32.mrf.mxu0  ;;  %v1884_v57 = vpop.f32.mrf.mxu1 }
 0x17f   : > { %2511 = vst [vmem:[%s4144_s12 + $0x100] sm:$0xff] %v2383_v49  ;;  %2575 = vst [vmem:[%s4144_s12 + $0x300] sm:$0xff] %v2447_v50  ;;  %v2386_v44 = vadd.f32 %v4141_v36, %v2250_v51  ;;  %v2450_v46 = vadd.f32 %v4141_v36, %v2314_v53  ;;  %v2249_v58 = vadd.f32 %v4383_v26, %v1564_v56 }
 0x180   : > { %v2313_v59 = vadd.f32 %v4387_v27, %v1884_v57  ;;  %v3117_v60 = vpop.f32.mrf.mxu0  ;;  %v3213_v62 = vpop.f32.mrf.mxu1 }
 0x181   : > { %2514 = vst [vmem:[%s4144_s12 + $0x118] sm:$0xff] %v2386_v44  ;;  %2578 = vst [vmem:[%s4144_s12 + $0x318] sm:$0xff] %v2450_v46  ;;  %v2385_v18 = vadd.f32 %v4153_v45, %v2249_v58  ;;  %v2252_v54 = vadd.f32 %v3117_v60, %v4383_v26  ;;  %v2316_v55 = vadd.f32 %v3213_v62, %v4387_v27 }
 0x182   : > { %v2449_v20 = vadd.f32 %v4153_v45, %v2313_v59  ;;  %v1574_v3 = vpop.f32.mrf.mxu0  ;;  %v1894_v5 = vpop.f32.mrf.mxu1  ;;  %v2083_v62 = vcombine.high %v4363_v63, %v4363_v63 }
 0x183   : > { %2513 = vst [vmem:[%s4144_s12 + $0x110] sm:$0xff] %v2385_v18  ;;  %v2388_v8 = vadd.f32 %v4162_v52, %v2252_v54  ;;  %v2452_v13 = vadd.f32 %v4162_v52, %v2316_v55  ;;  %v2251_v9 = vadd.f32 %v4383_v26, %v1574_v3  ;;  %v2315_v23 = vadd.f32 %v4387_v27, %v1894_v5 }
 0x184   : > { %2577 = vst [vmem:[%s4144_s12 + $0x310] sm:$0xff] %v2449_v20  ;;  %v3120_v25 = vpop.f32.mrf.mxu0  ;;  %v3216_v28 = vpop.f32.mrf.mxu1  ;;  %v2132_v18 = vcombine.high %v4367_v0, %v4367_v0 }
 0x185   : > { %2516 = vst [vmem:[%s4144_s12 + $0x128] sm:$0xff] %v2388_v8  ;;  %2580 = vst [vmem:[%s4144_s12 + $0x328] sm:$0xff] %v2452_v13  ;;  %v2387_v32 = vadd.f32 %v4177_v61, %v2251_v9  ;;  %v2451_v33 = vadd.f32 %v4177_v61, %v2315_v23  ;;  %v2254_v34 = vadd.f32 %v3120_v25, %v4383_v26 }
 0x186   : > { %v2318_v35 = vadd.f32 %v3216_v28, %v4387_v27  ;;  %v1584_v37 = vpop.f32.mrf.mxu0  ;;  %v1904_v21 = vpop.f32.mrf.mxu1  ;;  %v4508_v28 = vrot.slane %v2083_v62, %v4110_v19  ;;  %v2134_v62 = vcombine.high %v4433_v2, %v4433_v2 }
 0x187   : > { %2515 = vst [vmem:[%s4144_s12 + $0x120] sm:$0xff] %v2387_v32  ;;  %2579 = vst [vmem:[%s4144_s12 + $0x320] sm:$0xff] %v2451_v33  ;;  %v2390_v22 = vadd.f32 %v4186_v4, %v2254_v34  ;;  %v2253_v39 = vadd.f32 %v4383_v26, %v1584_v37  ;;  %v2317_v10 = vadd.f32 %v4387_v27, %v1904_v21 }
 0x188   : > { %v2454_v38 = vadd.f32 %v4186_v4, %v2318_v35  ;;  %v3123_v11 = vpop.f32.mrf.mxu0  ;;  %v3219_v6 = vpop.f32.mrf.mxu1  ;;  %v4511_v32 = vrot.slane %v2132_v18, %v4110_v19 }
 0x189   : > { %2518 = vst [vmem:[%s4144_s12 + $0x138] sm:$0xff] %v2390_v22  ;;  %v2389_v7 = vadd.f32 %v4203_v16, %v2253_v39  ;;  %v2453_v14 = vadd.f32 %v4203_v16, %v2317_v10  ;;  %v2256_v15 = vadd.f32 %v3123_v11, %v4449_v30  ;;  %v2320_v12 = vadd.f32 %v3219_v6, %v4453_v31 }
 0x18a   : > { %2582 = vst [vmem:[%s4144_s12 + $0x338] sm:$0xff] %v2454_v38  ;;  %v1594_v17 = vpop.f32.mrf.mxu0  ;;  %v1914_v40 = vpop.f32.mrf.mxu1 }
 0x18b   : > { %2517 = vst [vmem:[%s4144_s12 + $0x130] sm:$0xff] %v2389_v7  ;;  %2581 = vst [vmem:[%s4144_s12 + $0x330] sm:$0xff] %v2453_v14  ;;  %v2392_v26 = vadd.f32 %v4129_v24, %v2256_v15  ;;  %v2456_v27 = vadd.f32 %v4129_v24, %v2320_v12  ;;  %v2255_v41 = vadd.f32 %v4449_v30, %v1594_v17 }
 0x18c   : > { %v2319_v42 = vadd.f32 %v4453_v31, %v1914_v40  ;;  %v3126_v43 = vpop.f32.mrf.mxu0  ;;  %v3222_v47 = vpop.f32.mrf.mxu1 }
 0x18d   : > { %2520 = vst [vmem:[%s4144_s12 + $0x148] sm:$0xff] %v2392_v26  ;;  %2584 = vst [vmem:[%s4144_s12 + $0x348] sm:$0xff] %v2456_v27  ;;  %v2391_v48 = vadd.f32 %v4134_v29, %v2255_v41  ;;  %v2258_v50 = vadd.f32 %v3126_v43, %v4449_v30  ;;  %v2322_v51 = vadd.f32 %v3222_v47, %v4453_v31 }
 0x18e   : > { %v2455_v49 = vadd.f32 %v4134_v29, %v2319_v42  ;;  %v1604_v53 = vpop.f32.mrf.mxu0  ;;  %v1924_v56 = vpop.f32.mrf.mxu1 }
 0x18f   : > { %2519 = vst [vmem:[%s4144_s12 + $0x140] sm:$0xff] %v2391_v48  ;;  %v2394_v57 = vadd.f32 %v4141_v36, %v2258_v50  ;;  %v2458_v44 = vadd.f32 %v4141_v36, %v2322_v51  ;;  %v2257_v46 = vadd.f32 %v4449_v30, %v1604_v53  ;;  %v2321_v58 = vadd.f32 %v4453_v31, %v1924_v56 }
 0x190   : > { %2583 = vst [vmem:[%s4144_s12 + $0x340] sm:$0xff] %v2455_v49  ;;  %v3129_v59 = vpop.f32.mrf.mxu0  ;;  %v3225_v60 = vpop.f32.mrf.mxu1 }
 0x191   : > { %2522 = vst [vmem:[%s4144_s12 + $0x158] sm:$0xff] %v2394_v57  ;;  %2586 = vst [vmem:[%s4144_s12 + $0x358] sm:$0xff] %v2458_v44  ;;  %v2393_v20 = vadd.f32 %v4153_v45, %v2257_v46  ;;  %v2457_v54 = vadd.f32 %v4153_v45, %v2321_v58  ;;  %v2260_v55 = vadd.f32 %v3129_v59, %v4449_v30 }
 0x192   : > { %v2324_v3 = vadd.f32 %v3225_v60, %v4453_v31  ;;  %v1614_v5 = vpop.f32.mrf.mxu0  ;;  %v1934_v8 = vpop.f32.mrf.mxu1  ;;  %v2085_v60 = vcombine.high %v4430_v1, %v4430_v1 }
 0x193   : > { %2521 = vst [vmem:[%s4144_s12 + $0x150] sm:$0xff] %v2393_v20  ;;  %2585 = vst [vmem:[%s4144_s12 + $0x350] sm:$0xff] %v2457_v54  ;;  %v2396_v63 = vadd.f32 %v4162_v52, %v2260_v55  ;;  %v2259_v13 = vadd.f32 %v4449_v30, %v1614_v5  ;;  %v2323_v9 = vadd.f32 %v4453_v31, %v1934_v8 }
 0x194   : > { %v2460_v0 = vadd.f32 %v4162_v52, %v2324_v3  ;;  %v3132_v23 = vpop.f32.mrf.mxu0  ;;  %v3228_v25 = vpop.f32.mrf.mxu1 }
 0x195   : > { %2524 = vst [vmem:[%s4144_s12 + $0x168] sm:$0xff] %v2396_v63  ;;  %v2395_v33 = vadd.f32 %v4177_v61, %v2259_v13  ;;  %v2459_v34 = vadd.f32 %v4177_v61, %v2323_v9  ;;  %v2262_v35 = vadd.f32 %v3132_v23, %v4449_v30  ;;  %v2326_v37 = vadd.f32 %v3228_v25, %v4453_v31 }
 0x196   : > { %2588 = vst [vmem:[%s4144_s12 + $0x368] sm:$0xff] %v2460_v0  ;;  %v1624_v21 = vpop.f32.mrf.mxu0  ;;  %v1944_v22 = vpop.f32.mrf.mxu1  ;;  %v4566_v9 = vrot.slane %v2085_v60, %v4110_v19  ;;  %v4569_v23 = vrot.slane %v2134_v62, %v4110_v19 }
 0x197   : > { %2523 = vst [vmem:[%s4144_s12 + $0x160] sm:$0xff] %v2395_v33  ;;  %2587 = vst [vmem:[%s4144_s12 + $0x360] sm:$0xff] %v2459_v34  ;;  %v2398_v38 = vadd.f32 %v4186_v4, %v2262_v35  ;;  %v2462_v39 = vadd.f32 %v4186_v4, %v2326_v37  ;;  %v2261_v10 = vadd.f32 %v4449_v30, %v1624_v21 }
 0x198   : > { %v2325_v11 = vadd.f32 %v4453_v31, %v1944_v22  ;;  %v3135_v6 = vpop.f32.mrf.mxu0  ;;  %v3231_v7 = vpop.f32.mrf.mxu1 }
 0x199   : > { %2526 = vst [vmem:[%s4144_s12 + $0x178] sm:$0xff] %v2398_v38  ;;  %2590 = vst [vmem:[%s4144_s12 + $0x378] sm:$0xff] %v2462_v39  ;;  %v2397_v14 = vadd.f32 %v4203_v16, %v2261_v10  ;;  %v2264_v12 = vadd.f32 %v3135_v6, %v4508_v28  ;;  %v2328_v17 = vadd.f32 %v3231_v7, %v4511_v32 }
 0x19a   : > { %v2461_v15 = vadd.f32 %v4203_v16, %v2325_v11  ;;  %v1634_v40 = vpop.f32.mrf.mxu0  ;;  %v1954_v26 = vpop.f32.mrf.mxu1 }
 0x19b   : > { %2525 = vst [vmem:[%s4144_s12 + $0x170] sm:$0xff] %v2397_v14  ;;  %v2400_v30 = vadd.f32 %v4129_v24, %v2264_v12  ;;  %v2464_v31 = vadd.f32 %v4129_v24, %v2328_v17  ;;  %v2263_v27 = vadd.f32 %v4508_v28, %v1634_v40  ;;  %v2327_v41 = vadd.f32 %v4511_v32, %v1954_v26 }
 0x19c   : > { %2589 = vst [vmem:[%s4144_s12 + $0x370] sm:$0xff] %v2461_v15  ;;  %v3138_v42 = vpop.f32.mrf.mxu0  ;;  %v3234_v43 = vpop.f32.mrf.mxu1 }
 0x19d   : > { %2528 = vst [vmem:[%s4144_s12 + $0x188] sm:$0xff] %v2400_v30  ;;  %2592 = vst [vmem:[%s4144_s12 + $0x388] sm:$0xff] %v2464_v31  ;;  %v2399_v47 = vadd.f32 %v4134_v29, %v2263_v27  ;;  %v2463_v48 = vadd.f32 %v4134_v29, %v2327_v41  ;;  %v2266_v49 = vadd.f32 %v3138_v42, %v4508_v28 }
 0x19e   : > { %v2330_v50 = vadd.f32 %v3234_v43, %v4511_v32  ;;  %v1644_v51 = vpop.f32.mrf.mxu0  ;;  %v1964_v53 = vpop.f32.mrf.mxu1 }
 0x19f   : > { %2527 = vst [vmem:[%s4144_s12 + $0x180] sm:$0xff] %v2399_v47  ;;  %2591 = vst [vmem:[%s4144_s12 + $0x380] sm:$0xff] %v2463_v48  ;;  %v2402_v56 = vadd.f32 %v4141_v36, %v2266_v49  ;;  %v2265_v44 = vadd.f32 %v4508_v28, %v1644_v51  ;;  %v2329_v46 = vadd.f32 %v4511_v32, %v1964_v53 }
 0x1a0   : > { %v2466_v57 = vadd.f32 %v4141_v36, %v2330_v50  ;;  %v3141_v58 = vpop.f32.mrf.mxu0  ;;  %v3237_v59 = vpop.f32.mrf.mxu1 }
 0x1a1   : > { %2530 = vst [vmem:[%s4144_s12 + $0x198] sm:$0xff] %v2402_v56  ;;  %v2401_v18 = vadd.f32 %v4153_v45, %v2265_v44  ;;  %v2465_v20 = vadd.f32 %v4153_v45, %v2329_v46  ;;  %v2268_v54 = vadd.f32 %v3141_v58, %v4508_v28  ;;  %v2332_v55 = vadd.f32 %v3237_v59, %v4511_v32 }
 0x1a2   : > { %2594 = vst [vmem:[%s4144_s12 + $0x398] sm:$0xff] %v2466_v57  ;;  %v1654_v3 = vpop.f32.mrf.mxu0  ;;  %v1974_v5 = vpop.f32.mrf.mxu1 }
 0x1a3   : > { %2529 = vst [vmem:[%s4144_s12 + $0x190] sm:$0xff] %v2401_v18  ;;  %2593 = vst [vmem:[%s4144_s12 + $0x390] sm:$0xff] %v2465_v20  ;;  %v2404_v1 = vadd.f32 %v4162_v52, %v2268_v54  ;;  %v2468_v2 = vadd.f32 %v4162_v52, %v2332_v55  ;;  %v2267_v8 = vadd.f32 %v4508_v28, %v1654_v3 }
 0x1a4   : > { %v2331_v63 = vadd.f32 %v4511_v32, %v1974_v5  ;;  %v3144_v0 = vpop.f32.mrf.mxu0  ;;  %v3240_v13 = vpop.f32.mrf.mxu1 }
 0x1a5   : > { %2532 = vst [vmem:[%s4144_s12 + $0x1a8] sm:$0xff] %v2404_v1  ;;  %2596 = vst [vmem:[%s4144_s12 + $0x3a8] sm:$0xff] %v2468_v2  ;;  %v2403_v25 = vadd.f32 %v4177_v61, %v2267_v8  ;;  %v2270_v34 = vadd.f32 %v3144_v0, %v4508_v28  ;;  %v2334_v35 = vadd.f32 %v3240_v13, %v4511_v32 }
 0x1a6   : > { %v2467_v33 = vadd.f32 %v4177_v61, %v2331_v63  ;;  %v1664_v37 = vpop.f32.mrf.mxu0  ;;  %v1984_v21 = vpop.f32.mrf.mxu1 }
 0x1a7   : > { %2531 = vst [vmem:[%s4144_s12 + $0x1a0] sm:$0xff] %v2403_v25  ;;  %v2406_v19 = vadd.f32 %v4186_v4, %v2270_v34  ;;  %v2470_v22 = vadd.f32 %v4186_v4, %v2334_v35  ;;  %v2269_v38 = vadd.f32 %v4508_v28, %v1664_v37  ;;  %v2333_v39 = vadd.f32 %v4511_v32, %v1984_v21 }
 0x1a8   : > { %2595 = vst [vmem:[%s4144_s12 + $0x3a0] sm:$0xff] %v2467_v33  ;;  %v3147_v10 = vpop.f32.mrf.mxu0  ;;  %v3243_v11 = vpop.f32.mrf.mxu1 }
 0x1a9   : > { %2534 = vst [vmem:[%s4144_s12 + $0x1b8] sm:$0xff] %v2406_v19  ;;  %2598 = vst [vmem:[%s4144_s12 + $0x3b8] sm:$0xff] %v2470_v22  ;;  %v2405_v6 = vadd.f32 %v4203_v16, %v2269_v38  ;;  %v2469_v7 = vadd.f32 %v4203_v16, %v2333_v39  ;;  %v2272_v14 = vadd.f32 %v3147_v10, %v4566_v9 }
 0x1aa   : > { %v2336_v15 = vadd.f32 %v3243_v11, %v4569_v23  ;;  %v1674_v12 = vpop.f32.mrf.mxu0  ;;  %v1994_v17 = vpop.f32.mrf.mxu1 }
 0x1ab   : > { %2533 = vst [vmem:[%s4144_s12 + $0x1b0] sm:$0xff] %v2405_v6  ;;  %2597 = vst [vmem:[%s4144_s12 + $0x3b0] sm:$0xff] %v2469_v7  ;;  %v2408_v28 = vadd.f32 %v4129_v24, %v2272_v14  ;;  %v2271_v40 = vadd.f32 %v4566_v9, %v1674_v12  ;;  %v2335_v26 = vadd.f32 %v4569_v23, %v1994_v17 }
 0x1ac   : > { %v2472_v32 = vadd.f32 %v4129_v24, %v2336_v15  ;;  %v3150_v30 = vpop.f32.mrf.mxu0  ;;  %v3246_v31 = vpop.f32.mrf.mxu1 }
 0x1ad   : > { %2536 = vst [vmem:[%s4144_s12 + $0x1c8] sm:$0xff] %v2408_v28  ;;  %v2407_v27 = vadd.f32 %v4134_v29, %v2271_v40  ;;  %v2471_v41 = vadd.f32 %v4134_v29, %v2335_v26  ;;  %v2274_v42 = vadd.f32 %v3150_v30, %v4566_v9  ;;  %v2338_v43 = vadd.f32 %v3246_v31, %v4569_v23 }
 0x1ae   : > { %2600 = vst [vmem:[%s4144_s12 + $0x3c8] sm:$0xff] %v2472_v32  ;;  %v1684_v47 = vpop.f32.mrf.mxu0  ;;  %v2004_v24 = vpop.f32.mrf.mxu1 }
 0x1af   : > { %2535 = vst [vmem:[%s4144_s12 + $0x1c0] sm:$0xff] %v2407_v27  ;;  %2599 = vst [vmem:[%s4144_s12 + $0x3c0] sm:$0xff] %v2471_v41  ;;  %v2410_v48 = vadd.f32 %v4141_v36, %v2274_v42  ;;  %v2474_v49 = vadd.f32 %v4141_v36, %v2338_v43  ;;  %v2273_v50 = vadd.f32 %v4566_v9, %v1684_v47 }
 0x1b0   : > { %v2337_v51 = vadd.f32 %v4569_v23, %v2004_v24  ;;  %v3153_v53 = vpop.f32.mrf.mxu0  ;;  %v3249_v29 = vpop.f32.mrf.mxu1 }
 0x1b1   : > { %2538 = vst [vmem:[%s4144_s12 + $0x1d8] sm:$0xff] %v2410_v48  ;;  %2602 = vst [vmem:[%s4144_s12 + $0x3d8] sm:$0xff] %v2474_v49  ;;  %v2409_v56 = vadd.f32 %v4153_v45, %v2273_v50  ;;  %v2276_v44 = vadd.f32 %v3153_v53, %v4566_v9  ;;  %v2340_v46 = vadd.f32 %v3249_v29, %v4569_v23 }
 0x1b2   : > { %v2473_v57 = vadd.f32 %v4153_v45, %v2337_v51  ;;  %v1694_v58 = vpop.f32.mrf.mxu0  ;;  %v2014_v36 = vpop.f32.mrf.mxu1 }
 0x1b3   : > { %2537 = vst [vmem:[%s4144_s12 + $0x1d0] sm:$0xff] %v2409_v56  ;;  %v2412_v59 = vadd.f32 %v4162_v52, %v2276_v44  ;;  %v2476_v60 = vadd.f32 %v4162_v52, %v2340_v46  ;;  %v2275_v62 = vadd.f32 %v4566_v9, %v1694_v58  ;;  %v2339_v18 = vadd.f32 %v4569_v23, %v2014_v36 }
 0x1b4   : > { %2601 = vst [vmem:[%s4144_s12 + $0x3d0] sm:$0xff] %v2473_v57  ;;  %v3156_v20 = vpop.f32.mrf.mxu0  ;;  %v3252_v45 = vpop.f32.mrf.mxu1 }
 0x1b5   : > { %2540 = vst [vmem:[%s4144_s12 + $0x1e8] sm:$0xff] %v2412_v59  ;;  %2604 = vst [vmem:[%s4144_s12 + $0x3e8] sm:$0xff] %v2476_v60  ;;  %v2411_v54 = vadd.f32 %v4177_v61, %v2275_v62  ;;  %v2475_v55 = vadd.f32 %v4177_v61, %v2339_v18  ;;  %v2278_v3 = vadd.f32 %v3156_v20, %v4566_v9 }
 0x1b6   : > { %v2342_v52 = vadd.f32 %v3252_v45, %v4569_v23  ;;  %v1704_v5 = vpop.f32.mrf.mxu0  ;;  %v2024_v1 = vpop.f32.mrf.mxu1 }
 0x1b7   : > { %2539 = vst [vmem:[%s4144_s12 + $0x1e0] sm:$0xff] %v2411_v54  ;;  %2603 = vst [vmem:[%s4144_s12 + $0x3e0] sm:$0xff] %v2475_v55  ;;  %v2414_v2 = vadd.f32 %v4186_v4, %v2278_v3  ;;  %v2277_v63 = vadd.f32 %v4566_v9, %v1704_v5  ;;  %v2341_v0 = vadd.f32 %v4569_v23, %v2024_v1 }
 0x1b8   : > { %v2478_v8 = vadd.f32 %v4186_v4, %v2342_v52 }
 0x1b9   : > { %2542 = vst [vmem:[%s4144_s12 + $0x1f8] sm:$0xff] %v2414_v2  ;;  %v2413_v61 = vadd.f32 %v4203_v16, %v2277_v63  ;;  %v2477_v13 = vadd.f32 %v4203_v16, %v2341_v0 }
 0x1ba   : > { %2606 = vst [vmem:[%s4144_s12 + $0x3f8] sm:$0xff] %v2478_v8 }
 0x1bb   : > { %2541 = vst [vmem:[%s4144_s12 + $0x1f0] sm:$0xff] %v2413_v61  ;;  %2605 = vst [vmem:[%s4144_s12 + $0x3f0] sm:$0xff] %v2477_v13 }
 0x1bc   : > { %s2908_s13 = sshll.u32 %s3409_s19, 8  ;;  %s2634_s14 = sshll.u32 %s4144_s12, 4  ;;  %s2635_s14 = int_to_ptr.vmem [resolvable:$true] %s2634_s14 }
 0x1bd   : > { %s2621_s23 = sadd.s32 %s2908_s13, %s4093_s28  ;;  %s3424_s10 = smov 1024  }
 0x1be   : > { %s2904_s24 = sshll.u32 %s2621_s23, 7  ;;  %3269 = sst [smem:[#allocation6]] (%p3515_p8), %s3424_s10 }
 0x1bf   : > { %s2623_s18 = scalar_lea.hbm %s4691_s4, %s2904_s24  ;;  %s3425_s7 = smov 2048  }
 0x1c0   : > { %3270 = sst [smem:[#allocation6 + $0x1]] (%p3515_p8), %s3425_s7  ;;  %s3426_s9 = smov 8  }
 0x1c1   : > { %3271 = sst [smem:[#allocation6 + $0x2]] (%p3515_p8), %s3426_s9  ;;  %s3427_s11 = smov 128  }
 0x1c2   : > { %3272 = sst [smem:[#allocation6 + $0x3]] (%p3515_p8), %s3427_s11  ;;  %s3428_s19 = smov 131072  }
 0x1c3   : > { %3273 = sst [smem:[#allocation6 + $0x4]] (%p3515_p8), %s3427_s11  ;;  %s3429_s28 = smov 0  }
 0x1c4   : > { %3274 = sst [smem:[#allocation6 + $0x5]] (%p3515_p8), %s3426_s9 }
 0x1c5   : > { %3275 = dma.general (%p3515_p8), %s2635_s14, 16384, %s2623_s18, %s2608_s5, %s3428_s19, [#allocation6], %s3429_s28, 0  }
 0x1c6 PF: > { %p3281_p3 = scmp.ge.s32.totalorder %s3421_s22, 2  ;;  %s2662_s12 = sand.u32 1, %s3393_s15  }
 0x1c7   : > { %s2663_s13 = scalar_lea.sflag [#allocation4], %s2662_s12 }
 0x1c8   : > { %p3278_p4 = pnand %p3281_p3, %p3519_p9 }
 0x1ca   : > { %p3279_p5 = pneg %p3278_p4 }
 0x1cc   : > { %3388 = dma.done.wait (%p3279_p5), %s2663_s13, 16384  }
 0x1cd   : > { %3390 = vsyncadd (%p3279_p5), %s2663_s13, 4294950912  ;;  %s17_s22 = sadd.s32 1, %s3421_s22   ;;  %s4695_s15 = smov %s3397_s16 }
 0x1ce   : > { %p14_p6 = scmp.ge.s32.totalorder %s17_s22, 6   ;;  %s4696_s16 = smov %s3401_s17 }
 0x1cf   : > { %s4697_s17 = smov %s3527_s8  ;;  %s4698_s18 = smov %s3413_s20 }
 0x1d0   : > { %s4699_s19 = smov %s3417_s21  ;;  %s4700_s20 = smov %s4703_s25 }
 0x1d1   : > { %s4701_s21 = smov %s4707_s26  ;;  %16 = sbr.rel (!%p14_p6) target bundleno = 5 (0x5), region = 125 }
 0x1d6   :  { %2668 = vsyncpa [#allocation4], 1 }
 0x1d7   :  { %2670 = vsyncpa [#allocation4 + $0x1], 1 }

</bundles_post_ra>
